<compile_context>
chip_gen: v6e
topology: v6e:2x2x1
jax: 0.10.0
libtpu: 0.0.40
codegen_flags: <defaults>
</compile_context>

<pallas_src>
import functools

import jax
import jax.numpy as jnp
from jax.experimental import pallas as pl
from jax.experimental.pallas import tpu as pltpu


def _layernorm_f32(x, w, b, eps):
    mu = jnp.mean(x, axis=-1, keepdims=True)
    var = jnp.mean((x - mu) ** 2, axis=-1, keepdims=True)
    return (x - mu) * jax.lax.rsqrt(var + eps) * w + b


def _gelu_exact(x):
    # matches torch.nn.GELU() (erf-based, not tanh approximation)
    return 0.5 * x * (1.0 + jax.lax.erf(x * 0.7071067811865476))


def block_kernel(x_ref, ln1w_ref, ln1b_ref,
                 wq_ref, wk_ref, wv_ref, wproj_ref, bproj_ref, g1_ref,
                 ln2w_ref, ln2b_ref, w1_ref, b1_ref, w2_ref, b2_ref, g2_ref,
                 o_ref, *, num_heads, eps):
    # x_ref: (N, C) full sequence for this batch element
    # o_ref: (TN, C) output token tile
    N, C = x_ref.shape
    TN = o_ref.shape[0]
    H = num_heads
    hd = C // H

    t = pl.program_id(1)
    tok0 = pl.multiple_of(t * TN, TN)

    # residual-stream tile (f32 for LN / residual math; output cast back at store)
    x_t = x_ref[pl.ds(tok0, TN), :].astype(jnp.float32)                  # (TN, C)

    # ---- norm1 ----
    # K/V need the full sequence; the q tile recomputes its own rows (LayerNorm is
    # per-token, so this is exact and avoids a dynamic slice of a live array).
    x_full = x_ref[...].astype(jnp.float32)                              # (N, C)
    xn_full = _layernorm_f32(x_full, ln1w_ref[...], ln1b_ref[...], eps).astype(jnp.bfloat16)
    xn_t = _layernorm_f32(x_t, ln1w_ref[...], ln1b_ref[...], eps).astype(jnp.bfloat16)

    # ---- attention: bf16 MXU inputs, f32 accumulation ----
    # head scale is already folded into wq by the wrapper (one-time static transform)
    q = jnp.dot(xn_t, wq_ref[...], preferred_element_type=jnp.float32)   # (TN, C)
    k = jnp.dot(xn_full, wk_ref[...], preferred_element_type=jnp.float32)  # (N, C)
    v = jnp.dot(xn_full, wv_ref[...], preferred_element_type=jnp.float32)  # (N, C)

    qh = q.astype(jnp.bfloat16).reshape(TN, H, hd)
    kh = k.astype(jnp.bfloat16).reshape(N, H, hd)
    vh = v.astype(jnp.bfloat16).reshape(N, H, hd)

    # per-head matmuls expressed as dot_general with the head as a batch dim
    s = jnp.einsum('nhd,mhd->hnm', qh, kh,
                   preferred_element_type=jnp.float32)                   # (H, TN, N) f32
    s = s - jnp.max(s, axis=-1, keepdims=True)
    p = jnp.exp(s)
    # normalize via EUP approximate reciprocal instead of a VPU divide
    p = p * pl.reciprocal(jnp.sum(p, axis=-1, keepdims=True), approx=True)
    # NOTE: attn_drop / proj_drop / drop_path all have p=0.0 -> identity.

    av = jnp.einsum('hnm,mhd->nhd', p.astype(jnp.bfloat16), vh,
                    preferred_element_type=jnp.float32).reshape(TN, C)
    attn_out = jnp.dot(av.astype(jnp.bfloat16), wproj_ref[...],
                       preferred_element_type=jnp.float32) + bproj_ref[...]

    # ---- residual 1 with layer scale ----
    x_t = x_t + g1_ref[...] * attn_out

    # ---- norm2 + MLP ----
    xn2 = _layernorm_f32(x_t, ln2w_ref[...], ln2b_ref[...], eps)
    h = jnp.dot(xn2.astype(jnp.bfloat16), w1_ref[...],
                preferred_element_type=jnp.float32) + b1_ref[...]
    h = _gelu_exact(h)
    mlp_out = jnp.dot(h.astype(jnp.bfloat16), w2_ref[...],
                      preferred_element_type=jnp.float32) + b2_ref[...]

    # ---- residual 2 with layer scale ----
    x_t = x_t + g2_ref[...] * mlp_out
    o_ref[...] = x_t.astype(o_ref.dtype)


def _choose_token_tile(n, target):
    """Largest multiple-of-8 divisor of n that is <= target (or n itself if small)."""
    if n <= target:
        return n
    for cand in range(target, 7, -1):
        if cand % 8 == 0 and n % cand == 0:
            return cand
    # TODO(synk): pad/mask the token axis when N has no multiple-of-8 divisor <= target.
    return n


def layer_scale_init_block(x, params, num_heads, *, eps=1e-6,
                           token_tile_target=256,
                           vmem_limit_bytes=48 * 1024 * 1024):
    """Fused forward of Layer_scale_init_Block.  x: (B, N, C) float32/bfloat16."""
    B, N, C = x.shape
    hd = C // num_heads
    scale = hd ** -0.5
    f32, bf16 = jnp.float32, jnp.bfloat16

    # --- one-time static parameter transforms (outside the kernel) ---
    wqkv = params['wqkv'].astype(f32)
    wq = (wqkv[:, :C] * scale).astype(bf16)   # fold head scale into q weights
    wk = wqkv[:, C:2 * C].astype(bf16)
    wv = wqkv[:, 2 * C:].astype(bf16)
    wproj = params['wproj'].astype(bf16)
    w1 = params['w1'].astype(bf16)
    w2 = params['w2'].astype(bf16)
    vec = lambda v: v.reshape(1, -1).astype(f32)

    weight_args = (
        vec(params['ln1_w']), vec(params['ln1_b']),
        wq, wk, wv, wproj, vec(params['bproj']), vec(params['gamma1']),
        vec(params['ln2_w']), vec(params['ln2_b']),
        w1, vec(params['b1']), w2, vec(params['b2']), vec(params['gamma2']),
    )

    TN = _choose_token_tile(N, token_tile_target)
    T = N // TN
    kern = functools.partial(block_kernel, num_heads=num_heads, eps=eps)

    def build(single_buffer_weights):
        def wspec(a):
            zeros = (0,) * a.ndim
            if single_buffer_weights:
                # grid-invariant weights: one VMEM copy, no double buffering
                return pl.BlockSpec(a.shape, lambda b, t: zeros,
                                    pipeline_mode=pl.Buffered(1))
            return pl.BlockSpec(a.shape, lambda b, t: zeros)

        in_specs = [pl.BlockSpec((None, N, C), lambda b, t: (b, 0, 0))]
        in_specs += [wspec(a) for a in weight_args]
        out_specs = pl.BlockSpec((None, TN, C), lambda b, t: (b, t, 0))
        return pl.pallas_call(
            kern,
            out_shape=jax.ShapeDtypeStruct((B, N, C), x.dtype),
            grid=(B, T),
            in_specs=in_specs,
            out_specs=out_specs,
            compiler_params=pltpu.CompilerParams(
                dimension_semantics=("parallel", "parallel"),
                vmem_limit_bytes=vmem_limit_bytes),
        )

    args = (x,) + weight_args
    try:
        return build(single_buffer_weights=True)(*args)
    except Exception:
        # pl.Buffered(1) unsupported on this JAX version -> default (double) buffering
        return build(single_buffer_weights=False)(*args)


def reference(x, params, num_heads, eps=1e-6):
    """Pure-JAX (f32) reference of the PyTorch forward for validation."""
    B, N, C = x.shape
    hd = C // num_heads
    scale = hd ** (-0.5)

    xn = _layernorm_f32(x, params['ln1_w'], params['ln1_b'], eps)
    qkv = xn @ params['wqkv']                              # (B, N, 3C)
    qkv = qkv.reshape(B, N, 3, num_heads, hd).transpose(2, 0, 3, 1, 4)
    q, k, v = qkv[0] * scale, qkv[1], qkv[2]               # (B, H, N, hd)
    attn = jax.nn.softmax(q @ jnp.swapaxes(k, -2, -1), axis=-1)
    av = (attn @ v).transpose(0, 2, 1, 3).reshape(B, N, C)
    attn_out = av @ params['wproj'] + params['bproj']
    x = x + params['gamma1'] * attn_out

    xn2 = _layernorm_f32(x, params['ln2_w'], params['ln2_b'], eps)
    h = _gelu_exact(xn2 @ params['w1'] + params['b1'])
    mlp_out = h @ params['w2'] + params['b2']
    return x + params['gamma2'] * mlp_out


def make_params(key, dim, num_heads, mlp_ratio=4.0, init_values=1e-4):
    hidden = int(dim * mlp_ratio)
    ks = jax.random.split(key, 5)
    std = 0.02
    return {
        'ln1_w': jnp.ones((dim,), jnp.float32),
        'ln1_b': jnp.zeros((dim,), jnp.float32),
        # qkv_bias=False (module default) -> no qkv bias
        'wqkv': std * jax.random.normal(ks[0], (dim, 3 * dim), jnp.float32),
        'wproj': std * jax.random.normal(ks[1], (dim, dim), jnp.float32),
        'bproj': std * jax.random.normal(ks[2], (dim,), jnp.float32),
        'gamma1': init_values * jnp.ones((dim,), jnp.float32),
        'ln2_w': jnp.ones((dim,), jnp.float32),
        'ln2_b': jnp.zeros((dim,), jnp.float32),
        'w1': std * jax.random.normal(ks[3], (dim, hidden), jnp.float32),
        'b1': jnp.zeros((hidden,), jnp.float32),
        'w2': std * jax.random.normal(ks[4], (hidden, dim), jnp.float32),
        'b2': jnp.zeros((dim,), jnp.float32),
        'gamma2': init_values * jnp.ones((dim,), jnp.float32),
    }


if __name__ == "__main__":
    key = jax.random.PRNGKey(0)

    # --- test 1: tiny shapes, single token tile per batch element ---
    B, N, C, H = 2, 8, 32, 4
    kp, kx, key = jax.random.split(key, 3)
    # use a non-tiny layerscale so the test actually exercises attn/MLP numerics
    params = make_params(kp, C, H, init_values=0.5)
    x = jax.random.normal(kx, (B, N, C), jnp.float32)
    out = jax.block_until_ready(layer_scale_init_block(x, params, H))
    ref = reference(x, params, H)
    assert out.shape == (B, N, C)
    assert jnp.allclose(out, ref, atol=5e-3, rtol=5e-3), \
        f"max err {jnp.max(jnp.abs(out - ref))}"

    # --- test 2: (8,128)-aligned shapes with token tiling (grid = (2, 2)) ---
    B, N, C, H = 2, 64, 128, 8
    kp, kx, key = jax.random.split(key, 3)
    params = make_params(kp, C, H, init_values=0.5)
    x = jax.random.normal(kx, (B, N, C), jnp.float32)
    out = jax.block_until_ready(
        layer_scale_init_block(x, params, H, token_tile_target=32))
    ref = reference(x, params, H)
    assert out.shape == (B, N, C)
    assert jnp.allclose(out, ref, atol=5e-3, rtol=5e-3), \
        f"max err {jnp.max(jnp.abs(out - ref))}"

    print("KERNEL_OK")
</pallas_src>

<mosaic_0001>
module attributes {stable_mosaic.version = 11 : i64} {
  func.func @block_kernel(%arg0: i32, %arg1: i32, %arg2: memref<1x8x32xf32, #tpu.memory_space<vmem>>, %arg3: memref<1x32xf32, #tpu.memory_space<vmem>>, %arg4: memref<1x32xf32, #tpu.memory_space<vmem>>, %arg5: memref<32x32xbf16, #tpu.memory_space<vmem>>, %arg6: memref<32x32xbf16, #tpu.memory_space<vmem>>, %arg7: memref<32x32xbf16, #tpu.memory_space<vmem>>, %arg8: memref<32x32xbf16, #tpu.memory_space<vmem>>, %arg9: memref<1x32xf32, #tpu.memory_space<vmem>>, %arg10: memref<1x32xf32, #tpu.memory_space<vmem>>, %arg11: memref<1x32xf32, #tpu.memory_space<vmem>>, %arg12: memref<1x32xf32, #tpu.memory_space<vmem>>, %arg13: memref<32x128xbf16, #tpu.memory_space<vmem>>, %arg14: memref<1x128xf32, #tpu.memory_space<vmem>>, %arg15: memref<128x32xbf16, #tpu.memory_space<vmem>>, %arg16: memref<1x32xf32, #tpu.memory_space<vmem>>, %arg17: memref<1x32xf32, #tpu.memory_space<vmem>>, %arg18: memref<1x8x32xf32, #tpu.memory_space<vmem>>) attributes {dimension_semantics = [#tpu.dimension_semantics<parallel>, #tpu.dimension_semantics<parallel>], iteration_bounds = array<i64: 2, 1>, scalar_prefetch = 0 : i64, scratch_operands = 0 : i64, tpu.core_type = #tpu.core_type<tc>, window_params = [{transform_indices = @transform_0, window_bounds = array<i64: 1, 8, 32>}, {pipeline_mode = #tpu.pipeline_mode<synchronous>, transform_indices = @transform_1, window_bounds = array<i64: 1, 32>}, {pipeline_mode = #tpu.pipeline_mode<synchronous>, transform_indices = @transform_2, window_bounds = array<i64: 1, 32>}, {pipeline_mode = #tpu.pipeline_mode<synchronous>, transform_indices = @transform_3, window_bounds = array<i64: 32, 32>}, {pipeline_mode = #tpu.pipeline_mode<synchronous>, transform_indices = @transform_4, window_bounds = array<i64: 32, 32>}, {pipeline_mode = #tpu.pipeline_mode<synchronous>, transform_indices = @transform_5, window_bounds = array<i64: 32, 32>}, {pipeline_mode = #tpu.pipeline_mode<synchronous>, transform_indices = @transform_6, window_bounds = array<i64: 32, 32>}, {pipeline_mode = #tpu.pipeline_mode<synchronous>, transform_indices = @transform_7, window_bounds = array<i64: 1, 32>}, {pipeline_mode = #tpu.pipeline_mode<synchronous>, transform_indices = @transform_8, window_bounds = array<i64: 1, 32>}, {pipeline_mode = #tpu.pipeline_mode<synchronous>, transform_indices = @transform_9, window_bounds = array<i64: 1, 32>}, {pipeline_mode = #tpu.pipeline_mode<synchronous>, transform_indices = @transform_10, window_bounds = array<i64: 1, 32>}, {pipeline_mode = #tpu.pipeline_mode<synchronous>, transform_indices = @transform_11, window_bounds = array<i64: 32, 128>}, {pipeline_mode = #tpu.pipeline_mode<synchronous>, transform_indices = @transform_12, window_bounds = array<i64: 1, 128>}, {pipeline_mode = #tpu.pipeline_mode<synchronous>, transform_indices = @transform_13, window_bounds = array<i64: 128, 32>}, {pipeline_mode = #tpu.pipeline_mode<synchronous>, transform_indices = @transform_14, window_bounds = array<i64: 1, 32>}, {pipeline_mode = #tpu.pipeline_mode<synchronous>, transform_indices = @transform_15, window_bounds = array<i64: 1, 32>}, {transform_indices = @transform_16, window_bounds = array<i64: 1, 8, 32>}]} {
    %c8_i32 = arith.constant 8 : i32
    %0 = arith.muli %arg1, %c8_i32 : i32
    %1 = tpu.assume_multiple %0, 8 : i32
    %c0 = arith.constant 0 : index
    %2 = arith.index_cast %1 : i32 to index
    %c0_0 = arith.constant 0 : index
    %3 = vector.load %arg2[%c0, %2, %c0_0] : memref<1x8x32xf32, #tpu.memory_space<vmem>>, vector<1x8x32xf32>
    %4 = vector.shape_cast %3 : vector<1x8x32xf32> to vector<8x32xf32>
    %c0_1 = arith.constant 0 : index
    %c0_2 = arith.constant 0 : index
    %c0_3 = arith.constant 0 : index
    %5 = vector.load %arg2[%c0_1, %c0_2, %c0_3] : memref<1x8x32xf32, #tpu.memory_space<vmem>>, vector<1x8x32xf32>
    %6 = vector.shape_cast %5 : vector<1x8x32xf32> to vector<8x32xf32>
    %c0_4 = arith.constant 0 : index
    %c0_5 = arith.constant 0 : index
    %7 = vector.load %arg3[%c0_4, %c0_5] : memref<1x32xf32, #tpu.memory_space<vmem>>, vector<1x32xf32>
    %c0_6 = arith.constant 0 : index
    %c0_7 = arith.constant 0 : index
    %8 = vector.load %arg4[%c0_6, %c0_7] : memref<1x32xf32, #tpu.memory_space<vmem>>, vector<1x32xf32>
    %cst = arith.constant dense<0.000000e+00> : vector<8xf32>
    %9 = vector.multi_reduction <add>, %6, %cst [1] : vector<8x32xf32> to vector<8xf32>
    %10 = vector.shape_cast %9 : vector<8xf32> to vector<8x1xf32>
    %cst_8 = arith.constant 3.200000e+01 : f32
    %11 = vector.broadcast %cst_8 : f32 to vector<8x1xf32>
    %12 = arith.divf %10, %11 : vector<8x1xf32>
    %13 = vector.broadcast %12 : vector<8x1xf32> to vector<8x32xf32>
    %14 = arith.subf %6, %13 : vector<8x32xf32>
    %15 = arith.mulf %14, %14 : vector<8x32xf32>
    %cst_9 = arith.constant dense<0.000000e+00> : vector<8xf32>
    %16 = vector.multi_reduction <add>, %15, %cst_9 [1] : vector<8x32xf32> to vector<8xf32>
    %17 = vector.shape_cast %16 : vector<8xf32> to vector<8x1xf32>
    %cst_10 = arith.constant 3.200000e+01 : f32
    %18 = vector.broadcast %cst_10 : f32 to vector<8x1xf32>
    %19 = arith.divf %17, %18 : vector<8x1xf32>
    %20 = vector.broadcast %12 : vector<8x1xf32> to vector<8x32xf32>
    %21 = arith.subf %6, %20 : vector<8x32xf32>
    %cst_11 = arith.constant 9.99999997E-7 : f32
    %22 = vector.broadcast %cst_11 : f32 to vector<8x1xf32>
    %23 = arith.addf %19, %22 : vector<8x1xf32>
    %24 = math.rsqrt %23 : vector<8x1xf32>
    %25 = vector.broadcast %24 : vector<8x1xf32> to vector<8x32xf32>
    %26 = arith.mulf %21, %25 : vector<8x32xf32>
    %27 = vector.broadcast %7 : vector<1x32xf32> to vector<8x32xf32>
    %28 = arith.mulf %26, %27 : vector<8x32xf32>
    %29 = vector.broadcast %8 : vector<1x32xf32> to vector<8x32xf32>
    %30 = arith.addf %28, %29 : vector<8x32xf32>
    %31 = arith.truncf %30 : vector<8x32xf32> to vector<8x32xbf16>
    %c0_12 = arith.constant 0 : index
    %c0_13 = arith.constant 0 : index
    %32 = vector.load %arg3[%c0_12, %c0_13] : memref<1x32xf32, #tpu.memory_space<vmem>>, vector<1x32xf32>
    %c0_14 = arith.constant 0 : index
    %c0_15 = arith.constant 0 : index
    %33 = vector.load %arg4[%c0_14, %c0_15] : memref<1x32xf32, #tpu.memory_space<vmem>>, vector<1x32xf32>
    %cst_16 = arith.constant dense<0.000000e+00> : vector<8xf32>
    %34 = vector.multi_reduction <add>, %4, %cst_16 [1] : vector<8x32xf32> to vector<8xf32>
    %35 = vector.shape_cast %34 : vector<8xf32> to vector<8x1xf32>
    %cst_17 = arith.constant 3.200000e+01 : f32
    %36 = vector.broadcast %cst_17 : f32 to vector<8x1xf32>
    %37 = arith.divf %35, %36 : vector<8x1xf32>
    %38 = vector.broadcast %37 : vector<8x1xf32> to vector<8x32xf32>
    %39 = arith.subf %4, %38 : vector<8x32xf32>
    %40 = arith.mulf %39, %39 : vector<8x32xf32>
    %cst_18 = arith.constant dense<0.000000e+00> : vector<8xf32>
    %41 = vector.multi_reduction <add>, %40, %cst_18 [1] : vector<8x32xf32> to vector<8xf32>
    %42 = vector.shape_cast %41 : vector<8xf32> to vector<8x1xf32>
    %cst_19 = arith.constant 3.200000e+01 : f32
    %43 = vector.broadcast %cst_19 : f32 to vector<8x1xf32>
    %44 = arith.divf %42, %43 : vector<8x1xf32>
    %45 = vector.broadcast %37 : vector<8x1xf32> to vector<8x32xf32>
    %46 = arith.subf %4, %45 : vector<8x32xf32>
    %cst_20 = arith.constant 9.99999997E-7 : f32
    %47 = vector.broadcast %cst_20 : f32 to vector<8x1xf32>
    %48 = arith.addf %44, %47 : vector<8x1xf32>
    %49 = math.rsqrt %48 : vector<8x1xf32>
    %50 = vector.broadcast %49 : vector<8x1xf32> to vector<8x32xf32>
    %51 = arith.mulf %46, %50 : vector<8x32xf32>
    %52 = vector.broadcast %32 : vector<1x32xf32> to vector<8x32xf32>
    %53 = arith.mulf %51, %52 : vector<8x32xf32>
    %54 = vector.broadcast %33 : vector<1x32xf32> to vector<8x32xf32>
    %55 = arith.addf %53, %54 : vector<8x32xf32>
    %56 = arith.truncf %55 : vector<8x32xf32> to vector<8x32xbf16>
    %c0_21 = arith.constant 0 : index
    %c0_22 = arith.constant 0 : index
    %57 = vector.load %arg5[%c0_21, %c0_22] : memref<32x32xbf16, #tpu.memory_space<vmem>>, vector<32x32xbf16>
    %cst_23 = arith.constant dense<0.000000e+00> : vector<8x32xf32>
    %58 = tpu.matmul %56, %57, %cst_23 {dimension_numbers = #tpu.dot_dimension_numbers<[1], [0], [0], [1], [0, 0, 1, 1], [], []>} : vector<8x32xbf16>, vector<32x32xbf16>, vector<8x32xf32> -> vector<8x32xf32>
    %c0_24 = arith.constant 0 : index
    %c0_25 = arith.constant 0 : index
    %59 = vector.load %arg6[%c0_24, %c0_25] : memref<32x32xbf16, #tpu.memory_space<vmem>>, vector<32x32xbf16>
    %cst_26 = arith.constant dense<0.000000e+00> : vector<8x32xf32>
    %60 = tpu.matmul %31, %59, %cst_26 {dimension_numbers = #tpu.dot_dimension_numbers<[1], [0], [0], [1], [0, 0, 1, 1], [], []>} : vector<8x32xbf16>, vector<32x32xbf16>, vector<8x32xf32> -> vector<8x32xf32>
    %c0_27 = arith.constant 0 : index
    %c0_28 = arith.constant 0 : index
    %61 = vector.load %arg7[%c0_27, %c0_28] : memref<32x32xbf16, #tpu.memory_space<vmem>>, vector<32x32xbf16>
    %cst_29 = arith.constant dense<0.000000e+00> : vector<8x32xf32>
    %62 = tpu.matmul %31, %61, %cst_29 {dimension_numbers = #tpu.dot_dimension_numbers<[1], [0], [0], [1], [0, 0, 1, 1], [], []>} : vector<8x32xbf16>, vector<32x32xbf16>, vector<8x32xf32> -> vector<8x32xf32>
    %63 = arith.truncf %58 : vector<8x32xf32> to vector<8x32xbf16>
    %64 = vector.shape_cast %63 : vector<8x32xbf16> to vector<8x4x8xbf16>
    %65 = arith.truncf %60 : vector<8x32xf32> to vector<8x32xbf16>
    %66 = vector.shape_cast %65 : vector<8x32xbf16> to vector<8x4x8xbf16>
    %67 = arith.truncf %62 : vector<8x32xf32> to vector<8x32xbf16>
    %68 = vector.shape_cast %67 : vector<8x32xbf16> to vector<8x4x8xbf16>
    "tpu.trace_start"() <{level = 10 : i32, message = "nhd,mhd->hnm"}> : () -> ()
    %cst_30 = arith.constant dense<0.000000e+00> : vector<4x8x8xf32>
    %69 = tpu.matmul %64, %66, %cst_30 {dimension_numbers = #tpu.dot_dimension_numbers<[2], [2], [0], [0], [0, 1, 0, 0, 1, 0], [1], [1]>} : vector<8x4x8xbf16>, vector<8x4x8xbf16>, vector<4x8x8xf32> -> vector<4x8x8xf32>
    "tpu.trace_stop"() : () -> ()
    %cst_31 = arith.constant dense<0xFF800000> : vector<4x8xf32>
    %70 = vector.multi_reduction <maximumf>, %69, %cst_31 [2] : vector<4x8x8xf32> to vector<4x8xf32>
    %71 = vector.shape_cast %70 : vector<4x8xf32> to vector<4x8x1xf32>
    %72 = vector.broadcast %71 : vector<4x8x1xf32> to vector<4x8x8xf32>
    %73 = arith.subf %69, %72 : vector<4x8x8xf32>
    %74 = math.exp %73 : vector<4x8x8xf32>
    %cst_32 = arith.constant dense<0.000000e+00> : vector<4x8xf32>
    %75 = vector.multi_reduction <add>, %74, %cst_32 [2] : vector<4x8x8xf32> to vector<4x8xf32>
    %76 = vector.shape_cast %75 : vector<4x8xf32> to vector<4x8x1xf32>
    %77 = tpu.reciprocal %76 {approx = true} : vector<4x8x1xf32> -> vector<4x8x1xf32>
    %78 = vector.broadcast %77 : vector<4x8x1xf32> to vector<4x8x8xf32>
    %79 = arith.mulf %74, %78 : vector<4x8x8xf32>
    %80 = arith.truncf %79 : vector<4x8x8xf32> to vector<4x8x8xbf16>
    "tpu.trace_start"() <{level = 10 : i32, message = "hnm,mhd->nhd"}> : () -> ()
    %cst_33 = arith.constant dense<0.000000e+00> : vector<4x8x8xf32>
    %81 = tpu.matmul %68, %80, %cst_33 {dimension_numbers = #tpu.dot_dimension_numbers<[0], [2], [2], [1], [0, 1, 0, 2, 1, 1], [1], [0]>} : vector<8x4x8xbf16>, vector<4x8x8xbf16>, vector<4x8x8xf32> -> vector<4x8x8xf32>
    %82 = tpu.transpose %81, [2, 0, 1] : vector<4x8x8xf32> -> vector<8x4x8xf32>
    "tpu.trace_stop"() : () -> ()
    %83 = vector.shape_cast %82 : vector<8x4x8xf32> to vector<8x32xf32>
    %84 = arith.truncf %83 : vector<8x32xf32> to vector<8x32xbf16>
    %c0_34 = arith.constant 0 : index
    %c0_35 = arith.constant 0 : index
    %85 = vector.load %arg8[%c0_34, %c0_35] : memref<32x32xbf16, #tpu.memory_space<vmem>>, vector<32x32xbf16>
    %cst_36 = arith.constant dense<0.000000e+00> : vector<8x32xf32>
    %86 = tpu.matmul %84, %85, %cst_36 {dimension_numbers = #tpu.dot_dimension_numbers<[1], [0], [0], [1], [0, 0, 1, 1], [], []>} : vector<8x32xbf16>, vector<32x32xbf16>, vector<8x32xf32> -> vector<8x32xf32>
    %c0_37 = arith.constant 0 : index
    %c0_38 = arith.constant 0 : index
    %87 = vector.load %arg9[%c0_37, %c0_38] : memref<1x32xf32, #tpu.memory_space<vmem>>, vector<1x32xf32>
    %88 = vector.broadcast %87 : vector<1x32xf32> to vector<8x32xf32>
    %89 = arith.addf %86, %88 : vector<8x32xf32>
    %c0_39 = arith.constant 0 : index
    %c0_40 = arith.constant 0 : index
    %90 = vector.load %arg10[%c0_39, %c0_40] : memref<1x32xf32, #tpu.memory_space<vmem>>, vector<1x32xf32>
    %91 = vector.broadcast %90 : vector<1x32xf32> to vector<8x32xf32>
    %92 = arith.mulf %91, %89 : vector<8x32xf32>
    %93 = arith.addf %4, %92 : vector<8x32xf32>
    %c0_41 = arith.constant 0 : index
    %c0_42 = arith.constant 0 : index
    %94 = vector.load %arg11[%c0_41, %c0_42] : memref<1x32xf32, #tpu.memory_space<vmem>>, vector<1x32xf32>
    %c0_43 = arith.constant 0 : index
    %c0_44 = arith.constant 0 : index
    %95 = vector.load %arg12[%c0_43, %c0_44] : memref<1x32xf32, #tpu.memory_space<vmem>>, vector<1x32xf32>
    %cst_45 = arith.constant dense<0.000000e+00> : vector<8xf32>
    %96 = vector.multi_reduction <add>, %93, %cst_45 [1] : vector<8x32xf32> to vector<8xf32>
    %97 = vector.shape_cast %96 : vector<8xf32> to vector<8x1xf32>
    %cst_46 = arith.constant 3.200000e+01 : f32
    %98 = vector.broadcast %cst_46 : f32 to vector<8x1xf32>
    %99 = arith.divf %97, %98 : vector<8x1xf32>
    %100 = vector.broadcast %99 : vector<8x1xf32> to vector<8x32xf32>
    %101 = arith.subf %93, %100 : vector<8x32xf32>
    %102 = arith.mulf %101, %101 : vector<8x32xf32>
    %cst_47 = arith.constant dense<0.000000e+00> : vector<8xf32>
    %103 = vector.multi_reduction <add>, %102, %cst_47 [1] : vector<8x32xf32> to vector<8xf32>
    %104 = vector.shape_cast %103 : vector<8xf32> to vector<8x1xf32>
    %cst_48 = arith.constant 3.200000e+01 : f32
    %105 = vector.broadcast %cst_48 : f32 to vector<8x1xf32>
    %106 = arith.divf %104, %105 : vector<8x1xf32>
    %107 = vector.broadcast %99 : vector<8x1xf32> to vector<8x32xf32>
    %108 = arith.subf %93, %107 : vector<8x32xf32>
    %cst_49 = arith.constant 9.99999997E-7 : f32
    %109 = vector.broadcast %cst_49 : f32 to vector<8x1xf32>
    %110 = arith.addf %106, %109 : vector<8x1xf32>
    %111 = math.rsqrt %110 : vector<8x1xf32>
    %112 = vector.broadcast %111 : vector<8x1xf32> to vector<8x32xf32>
    %113 = arith.mulf %108, %112 : vector<8x32xf32>
    %114 = vector.broadcast %94 : vector<1x32xf32> to vector<8x32xf32>
    %115 = arith.mulf %113, %114 : vector<8x32xf32>
    %116 = vector.broadcast %95 : vector<1x32xf32> to vector<8x32xf32>
    %117 = arith.addf %115, %116 : vector<8x32xf32>
    %118 = arith.truncf %117 : vector<8x32xf32> to vector<8x32xbf16>
    %c0_50 = arith.constant 0 : index
    %c0_51 = arith.constant 0 : index
    %119 = vector.load %arg13[%c0_50, %c0_51] : memref<32x128xbf16, #tpu.memory_space<vmem>>, vector<32x128xbf16>
    %cst_52 = arith.constant dense<0.000000e+00> : vector<8x128xf32>
    %120 = tpu.matmul %118, %119, %cst_52 {dimension_numbers = #tpu.dot_dimension_numbers<[1], [0], [0], [1], [0, 0, 1, 1], [], []>} : vector<8x32xbf16>, vector<32x128xbf16>, vector<8x128xf32> -> vector<8x128xf32>
    %c0_53 = arith.constant 0 : index
    %c0_54 = arith.constant 0 : index
    %121 = vector.load %arg14[%c0_53, %c0_54] : memref<1x128xf32, #tpu.memory_space<vmem>>, vector<1x128xf32>
    %122 = vector.broadcast %121 : vector<1x128xf32> to vector<8x128xf32>
    %123 = arith.addf %120, %122 : vector<8x128xf32>
    %cst_55 = arith.constant 5.000000e-01 : f32
    %124 = vector.broadcast %cst_55 : f32 to vector<8x128xf32>
    %125 = arith.mulf %124, %123 : vector<8x128xf32>
    %cst_56 = arith.constant 0.707106769 : f32
    %126 = vector.broadcast %cst_56 : f32 to vector<8x128xf32>
    %127 = arith.mulf %123, %126 : vector<8x128xf32>
    %128 = math.erf %127 : vector<8x128xf32>
    %cst_57 = arith.constant 1.000000e+00 : f32
    %129 = vector.broadcast %cst_57 : f32 to vector<8x128xf32>
    %130 = arith.addf %129, %128 : vector<8x128xf32>
    %131 = arith.mulf %125, %130 : vector<8x128xf32>
    %132 = arith.truncf %131 : vector<8x128xf32> to vector<8x128xbf16>
    %c0_58 = arith.constant 0 : index
    %c0_59 = arith.constant 0 : index
    %133 = vector.load %arg15[%c0_58, %c0_59] : memref<128x32xbf16, #tpu.memory_space<vmem>>, vector<128x32xbf16>
    %cst_60 = arith.constant dense<0.000000e+00> : vector<8x32xf32>
    %134 = tpu.matmul %132, %133, %cst_60 {dimension_numbers = #tpu.dot_dimension_numbers<[1], [0], [0], [1], [0, 0, 1, 1], [], []>} : vector<8x128xbf16>, vector<128x32xbf16>, vector<8x32xf32> -> vector<8x32xf32>
    %c0_61 = arith.constant 0 : index
    %c0_62 = arith.constant 0 : index
    %135 = vector.load %arg16[%c0_61, %c0_62] : memref<1x32xf32, #tpu.memory_space<vmem>>, vector<1x32xf32>
    %136 = vector.broadcast %135 : vector<1x32xf32> to vector<8x32xf32>
    %137 = arith.addf %134, %136 : vector<8x32xf32>
    %c0_63 = arith.constant 0 : index
    %c0_64 = arith.constant 0 : index
    %138 = vector.load %arg17[%c0_63, %c0_64] : memref<1x32xf32, #tpu.memory_space<vmem>>, vector<1x32xf32>
    %139 = vector.broadcast %138 : vector<1x32xf32> to vector<8x32xf32>
    %140 = arith.mulf %139, %137 : vector<8x32xf32>
    %141 = arith.addf %93, %140 : vector<8x32xf32>
    %c0_65 = arith.constant 0 : index
    %c0_66 = arith.constant 0 : index
    %c0_67 = arith.constant 0 : index
    %142 = vector.load %arg18[%c0_65, %c0_66, %c0_67] : memref<1x8x32xf32, #tpu.memory_space<vmem>>, vector<1x8x32xf32>
    %143 = vector.shape_cast %142 : vector<1x8x32xf32> to vector<8x32xf32>
    %144 = vector.shape_cast %141 : vector<8x32xf32> to vector<1x8x32xf32>
    tpu.vector_store %arg18[%c0_65, %c0_66, %c0_67], %144 {strides = array<i32>} : memref<1x8x32xf32, #tpu.memory_space<vmem>>, vector<1x8x32xf32>,
    return
  }
  func.func @transform_0(%arg0: i32, %arg1: i32) -> (i32, i32, i32) {
    %c0_i32 = arith.constant 0 : i32
    %c0_i32_0 = arith.constant 0 : i32
    %c0_i32_1 = arith.constant 0 : i32
    return %arg0, %c0_i32, %c0_i32_0 : i32, i32, i32
  }
  func.func @transform_1(%arg0: i32, %arg1: i32) -> (i32, i32) {
    %c0_i32 = arith.constant 0 : i32
    %c0_i32_0 = arith.constant 0 : i32
    %c0_i32_1 = arith.constant 0 : i32
    return %c0_i32, %c0_i32_0 : i32, i32
  }
  func.func @transform_2(%arg0: i32, %arg1: i32) -> (i32, i32) {
    %c0_i32 = arith.constant 0 : i32
    %c0_i32_0 = arith.constant 0 : i32
    %c0_i32_1 = arith.constant 0 : i32
    return %c0_i32, %c0_i32_0 : i32, i32
  }
  func.func @transform_3(%arg0: i32, %arg1: i32) -> (i32, i32) {
    %c0_i32 = arith.constant 0 : i32
    %c0_i32_0 = arith.constant 0 : i32
    %c0_i32_1 = arith.constant 0 : i32
    return %c0_i32, %c0_i32_0 : i32, i32
  }
  func.func @transform_4(%arg0: i32, %arg1: i32) -> (i32, i32) {
    %c0_i32 = arith.constant 0 : i32
    %c0_i32_0 = arith.constant 0 : i32
    %c0_i32_1 = arith.constant 0 : i32
    return %c0_i32, %c0_i32_0 : i32, i32
  }
  func.func @transform_5(%arg0: i32, %arg1: i32) -> (i32, i32) {
    %c0_i32 = arith.constant 0 : i32
    %c0_i32_0 = arith.constant 0 : i32
    %c0_i32_1 = arith.constant 0 : i32
    return %c0_i32, %c0_i32_0 : i32, i32
  }
  func.func @transform_6(%arg0: i32, %arg1: i32) -> (i32, i32) {
    %c0_i32 = arith.constant 0 : i32
    %c0_i32_0 = arith.constant 0 : i32
    %c0_i32_1 = arith.constant 0 : i32
    return %c0_i32, %c0_i32_0 : i32, i32
  }
  func.func @transform_7(%arg0: i32, %arg1: i32) -> (i32, i32) {
    %c0_i32 = arith.constant 0 : i32
    %c0_i32_0 = arith.constant 0 : i32
    %c0_i32_1 = arith.constant 0 : i32
    return %c0_i32, %c0_i32_0 : i32, i32
  }
  func.func @transform_8(%arg0: i32, %arg1: i32) -> (i32, i32) {
    %c0_i32 = arith.constant 0 : i32
    %c0_i32_0 = arith.constant 0 : i32
    %c0_i32_1 = arith.constant 0 : i32
    return %c0_i32, %c0_i32_0 : i32, i32
  }
  func.func @transform_9(%arg0: i32, %arg1: i32) -> (i32, i32) {
    %c0_i32 = arith.constant 0 : i32
    %c0_i32_0 = arith.constant 0 : i32
    %c0_i32_1 = arith.constant 0 : i32
    return %c0_i32, %c0_i32_0 : i32, i32
  }
  func.func @transform_10(%arg0: i32, %arg1: i32) -> (i32, i32) {
    %c0_i32 = arith.constant 0 : i32
    %c0_i32_0 = arith.constant 0 : i32
    %c0_i32_1 = arith.constant 0 : i32
    return %c0_i32, %c0_i32_0 : i32, i32
  }
  func.func @transform_11(%arg0: i32, %arg1: i32) -> (i32, i32) {
    %c0_i32 = arith.constant 0 : i32
    %c0_i32_0 = arith.constant 0 : i32
    %c0_i32_1 = arith.constant 0 : i32
    return %c0_i32, %c0_i32_0 : i32, i32
  }
  func.func @transform_12(%arg0: i32, %arg1: i32) -> (i32, i32) {
    %c0_i32 = arith.constant 0 : i32
    %c0_i32_0 = arith.constant 0 : i32
    %c0_i32_1 = arith.constant 0 : i32
    return %c0_i32, %c0_i32_0 : i32, i32
  }
  func.func @transform_13(%arg0: i32, %arg1: i32) -> (i32, i32) {
    %c0_i32 = arith.constant 0 : i32
    %c0_i32_0 = arith.constant 0 : i32
    %c0_i32_1 = arith.constant 0 : i32
    return %c0_i32, %c0_i32_0 : i32, i32
  }
  func.func @transform_14(%arg0: i32, %arg1: i32) -> (i32, i32) {
    %c0_i32 = arith.constant 0 : i32
    %c0_i32_0 = arith.constant 0 : i32
    %c0_i32_1 = arith.constant 0 : i32
    return %c0_i32, %c0_i32_0 : i32, i32
  }
  func.func @transform_15(%arg0: i32, %arg1: i32) -> (i32, i32) {
    %c0_i32 = arith.constant 0 : i32
    %c0_i32_0 = arith.constant 0 : i32
    %c0_i32_1 = arith.constant 0 : i32
    return %c0_i32, %c0_i32_0 : i32, i32
  }
  func.func @transform_16(%arg0: i32, %arg1: i32) -> (i32, i32, i32) {
    %c0_i32 = arith.constant 0 : i32
    %c0_i32_0 = arith.constant 0 : i32
    return %arg0, %arg1, %c0_i32 : i32, i32, i32
  }
}

module attributes {stable_mosaic.version = 11 : i64} {
  func.func @block_kernel(%arg0: i32, %arg1: i32, %arg2: memref<1x8x32xf32, #tpu.memory_space<vmem>>, %arg3: memref<1x32xf32, #tpu.memory_space<vmem>>, %arg4: memref<1x32xf32, #tpu.memory_space<vmem>>, %arg5: memref<32x32xbf16, #tpu.memory_space<vmem>>, %arg6: memref<32x32xbf16, #tpu.memory_space<vmem>>, %arg7: memref<32x32xbf16, #tpu.memory_space<vmem>>, %arg8: memref<32x32xbf16, #tpu.memory_space<vmem>>, %arg9: memref<1x32xf32, #tpu.memory_space<vmem>>, %arg10: memref<1x32xf32, #tpu.memory_space<vmem>>, %arg11: memref<1x32xf32, #tpu.memory_space<vmem>>, %arg12: memref<1x32xf32, #tpu.memory_space<vmem>>, %arg13: memref<32x128xbf16, #tpu.memory_space<vmem>>, %arg14: memref<1x128xf32, #tpu.memory_space<vmem>>, %arg15: memref<128x32xbf16, #tpu.memory_space<vmem>>, %arg16: memref<1x32xf32, #tpu.memory_space<vmem>>, %arg17: memref<1x32xf32, #tpu.memory_space<vmem>>, %arg18: memref<1x8x32xf32, #tpu.memory_space<vmem>>) attributes {dimension_semantics = [#tpu.dimension_semantics<parallel>, #tpu.dimension_semantics<parallel>], iteration_bounds = array<i64: 2, 1>, scalar_prefetch = 0 : i64, scratch_operands = 0 : i64, tpu.core_type = #tpu.core_type<tc>, window_params = [{transform_indices = @transform_0, window_bounds = array<i64: 1, 8, 32>}, {pipeline_mode = #tpu.pipeline_mode<synchronous>, transform_indices = @transform_1, window_bounds = array<i64: 1, 32>}, {pipeline_mode = #tpu.pipeline_mode<synchronous>, transform_indices = @transform_2, window_bounds = array<i64: 1, 32>}, {pipeline_mode = #tpu.pipeline_mode<synchronous>, transform_indices = @transform_3, window_bounds = array<i64: 32, 32>}, {pipeline_mode = #tpu.pipeline_mode<synchronous>, transform_indices = @transform_4, window_bounds = array<i64: 32, 32>}, {pipeline_mode = #tpu.pipeline_mode<synchronous>, transform_indices = @transform_5, window_bounds = array<i64: 32, 32>}, {pipeline_mode = #tpu.pipeline_mode<synchronous>, transform_indices = @transform_6, window_bounds = array<i64: 32, 32>}, {pipeline_mode = #tpu.pipeline_mode<synchronous>, transform_indices = @transform_7, window_bounds = array<i64: 1, 32>}, {pipeline_mode = #tpu.pipeline_mode<synchronous>, transform_indices = @transform_8, window_bounds = array<i64: 1, 32>}, {pipeline_mode = #tpu.pipeline_mode<synchronous>, transform_indices = @transform_9, window_bounds = array<i64: 1, 32>}, {pipeline_mode = #tpu.pipeline_mode<synchronous>, transform_indices = @transform_10, window_bounds = array<i64: 1, 32>}, {pipeline_mode = #tpu.pipeline_mode<synchronous>, transform_indices = @transform_11, window_bounds = array<i64: 32, 128>}, {pipeline_mode = #tpu.pipeline_mode<synchronous>, transform_indices = @transform_12, window_bounds = array<i64: 1, 128>}, {pipeline_mode = #tpu.pipeline_mode<synchronous>, transform_indices = @transform_13, window_bounds = array<i64: 128, 32>}, {pipeline_mode = #tpu.pipeline_mode<synchronous>, transform_indices = @transform_14, window_bounds = array<i64: 1, 32>}, {pipeline_mode = #tpu.pipeline_mode<synchronous>, transform_indices = @transform_15, window_bounds = array<i64: 1, 32>}, {transform_indices = @transform_16, window_bounds = array<i64: 1, 8, 32>}]} {
    %c8_i32 = arith.constant 8 : i32
    %0 = arith.muli %arg1, %c8_i32 : i32
    %1 = tpu.assume_multiple %0, 8 : i32
    %c0 = arith.constant 0 : index
    %2 = arith.index_cast %1 : i32 to index
    %c0_0 = arith.constant 0 : index
    %3 = vector.load %arg2[%c0, %2, %c0_0] : memref<1x8x32xf32, #tpu.memory_space<vmem>>, vector<1x8x32xf32>
    %4 = vector.shape_cast %3 : vector<1x8x32xf32> to vector<8x32xf32>
    %c0_1 = arith.constant 0 : index
    %c0_2 = arith.constant 0 : index
    %c0_3 = arith.constant 0 : index
    %5 = vector.load %arg2[%c0_1, %c0_2, %c0_3] : memref<1x8x32xf32, #tpu.memory_space<vmem>>, vector<1x8x32xf32>
    %6 = vector.shape_cast %5 : vector<1x8x32xf32> to vector<8x32xf32>
    %c0_4 = arith.constant 0 : index
    %c0_5 = arith.constant 0 : index
    %7 = vector.load %arg3[%c0_4, %c0_5] : memref<1x32xf32, #tpu.memory_space<vmem>>, vector<1x32xf32>
    %c0_6 = arith.constant 0 : index
    %c0_7 = arith.constant 0 : index
    %8 = vector.load %arg4[%c0_6, %c0_7] : memref<1x32xf32, #tpu.memory_space<vmem>>, vector<1x32xf32>
    %cst = arith.constant dense<0.000000e+00> : vector<8xf32>
    %9 = vector.multi_reduction <add>, %6, %cst [1] : vector<8x32xf32> to vector<8xf32>
    %10 = vector.shape_cast %9 : vector<8xf32> to vector<8x1xf32>
    %cst_8 = arith.constant 3.200000e+01 : f32
    %11 = vector.broadcast %cst_8 : f32 to vector<8x1xf32>
    %12 = arith.divf %10, %11 : vector<8x1xf32>
    %13 = vector.broadcast %12 : vector<8x1xf32> to vector<8x32xf32>
    %14 = arith.subf %6, %13 : vector<8x32xf32>
    %15 = arith.mulf %14, %14 : vector<8x32xf32>
    %cst_9 = arith.constant dense<0.000000e+00> : vector<8xf32>
    %16 = vector.multi_reduction <add>, %15, %cst_9 [1] : vector<8x32xf32> to vector<8xf32>
    %17 = vector.shape_cast %16 : vector<8xf32> to vector<8x1xf32>
    %cst_10 = arith.constant 3.200000e+01 : f32
    %18 = vector.broadcast %cst_10 : f32 to vector<8x1xf32>
    %19 = arith.divf %17, %18 : vector<8x1xf32>
    %20 = vector.broadcast %12 : vector<8x1xf32> to vector<8x32xf32>
    %21 = arith.subf %6, %20 : vector<8x32xf32>
    %cst_11 = arith.constant 9.99999997E-7 : f32
    %22 = vector.broadcast %cst_11 : f32 to vector<8x1xf32>
    %23 = arith.addf %19, %22 : vector<8x1xf32>
    %24 = math.rsqrt %23 : vector<8x1xf32>
    %25 = vector.broadcast %24 : vector<8x1xf32> to vector<8x32xf32>
    %26 = arith.mulf %21, %25 : vector<8x32xf32>
    %27 = vector.broadcast %7 : vector<1x32xf32> to vector<8x32xf32>
    %28 = arith.mulf %26, %27 : vector<8x32xf32>
    %29 = vector.broadcast %8 : vector<1x32xf32> to vector<8x32xf32>
    %30 = arith.addf %28, %29 : vector<8x32xf32>
    %31 = arith.truncf %30 : vector<8x32xf32> to vector<8x32xbf16>
    %c0_12 = arith.constant 0 : index
    %c0_13 = arith.constant 0 : index
    %32 = vector.load %arg3[%c0_12, %c0_13] : memref<1x32xf32, #tpu.memory_space<vmem>>, vector<1x32xf32>
    %c0_14 = arith.constant 0 : index
    %c0_15 = arith.constant 0 : index
    %33 = vector.load %arg4[%c0_14, %c0_15] : memref<1x32xf32, #tpu.memory_space<vmem>>, vector<1x32xf32>
    %cst_16 = arith.constant dense<0.000000e+00> : vector<8xf32>
    %34 = vector.multi_reduction <add>, %4, %cst_16 [1] : vector<8x32xf32> to vector<8xf32>
    %35 = vector.shape_cast %34 : vector<8xf32> to vector<8x1xf32>
    %cst_17 = arith.constant 3.200000e+01 : f32
    %36 = vector.broadcast %cst_17 : f32 to vector<8x1xf32>
    %37 = arith.divf %35, %36 : vector<8x1xf32>
    %38 = vector.broadcast %37 : vector<8x1xf32> to vector<8x32xf32>
    %39 = arith.subf %4, %38 : vector<8x32xf32>
    %40 = arith.mulf %39, %39 : vector<8x32xf32>
    %cst_18 = arith.constant dense<0.000000e+00> : vector<8xf32>
    %41 = vector.multi_reduction <add>, %40, %cst_18 [1] : vector<8x32xf32> to vector<8xf32>
    %42 = vector.shape_cast %41 : vector<8xf32> to vector<8x1xf32>
    %cst_19 = arith.constant 3.200000e+01 : f32
    %43 = vector.broadcast %cst_19 : f32 to vector<8x1xf32>
    %44 = arith.divf %42, %43 : vector<8x1xf32>
    %45 = vector.broadcast %37 : vector<8x1xf32> to vector<8x32xf32>
    %46 = arith.subf %4, %45 : vector<8x32xf32>
    %cst_20 = arith.constant 9.99999997E-7 : f32
    %47 = vector.broadcast %cst_20 : f32 to vector<8x1xf32>
    %48 = arith.addf %44, %47 : vector<8x1xf32>
    %49 = math.rsqrt %48 : vector<8x1xf32>
    %50 = vector.broadcast %49 : vector<8x1xf32> to vector<8x32xf32>
    %51 = arith.mulf %46, %50 : vector<8x32xf32>
    %52 = vector.broadcast %32 : vector<1x32xf32> to vector<8x32xf32>
    %53 = arith.mulf %51, %52 : vector<8x32xf32>
    %54 = vector.broadcast %33 : vector<1x32xf32> to vector<8x32xf32>
    %55 = arith.addf %53, %54 : vector<8x32xf32>
    %56 = arith.truncf %55 : vector<8x32xf32> to vector<8x32xbf16>
    %c0_21 = arith.constant 0 : index
    %c0_22 = arith.constant 0 : index
    %57 = vector.load %arg5[%c0_21, %c0_22] : memref<32x32xbf16, #tpu.memory_space<vmem>>, vector<32x32xbf16>
    %cst_23 = arith.constant dense<0.000000e+00> : vector<8x32xf32>
    %58 = tpu.matmul %56, %57, %cst_23 {dimension_numbers = #tpu.dot_dimension_numbers<[1], [0], [0], [1], [0, 0, 1, 1], [], []>} : vector<8x32xbf16>, vector<32x32xbf16>, vector<8x32xf32> -> vector<8x32xf32>
    %c0_24 = arith.constant 0 : index
    %c0_25 = arith.constant 0 : index
    %59 = vector.load %arg6[%c0_24, %c0_25] : memref<32x32xbf16, #tpu.memory_space<vmem>>, vector<32x32xbf16>
    %cst_26 = arith.constant dense<0.000000e+00> : vector<8x32xf32>
    %60 = tpu.matmul %31, %59, %cst_26 {dimension_numbers = #tpu.dot_dimension_numbers<[1], [0], [0], [1], [0, 0, 1, 1], [], []>} : vector<8x32xbf16>, vector<32x32xbf16>, vector<8x32xf32> -> vector<8x32xf32>
    %c0_27 = arith.constant 0 : index
    %c0_28 = arith.constant 0 : index
    %61 = vector.load %arg7[%c0_27, %c0_28] : memref<32x32xbf16, #tpu.memory_space<vmem>>, vector<32x32xbf16>
    %cst_29 = arith.constant dense<0.000000e+00> : vector<8x32xf32>
    %62 = tpu.matmul %31, %61, %cst_29 {dimension_numbers = #tpu.dot_dimension_numbers<[1], [0], [0], [1], [0, 0, 1, 1], [], []>} : vector<8x32xbf16>, vector<32x32xbf16>, vector<8x32xf32> -> vector<8x32xf32>
    %63 = arith.truncf %58 : vector<8x32xf32> to vector<8x32xbf16>
    %64 = vector.shape_cast %63 : vector<8x32xbf16> to vector<8x4x8xbf16>
    %65 = arith.truncf %60 : vector<8x32xf32> to vector<8x32xbf16>
    %66 = vector.shape_cast %65 : vector<8x32xbf16> to vector<8x4x8xbf16>
    %67 = arith.truncf %62 : vector<8x32xf32> to vector<8x32xbf16>
    %68 = vector.shape_cast %67 : vector<8x32xbf16> to vector<8x4x8xbf16>
    "tpu.trace_start"() <{level = 10 : i32, message = "nhd,mhd->hnm"}> : () -> ()
    %cst_30 = arith.constant dense<0.000000e+00> : vector<4x8x8xf32>
    %69 = tpu.matmul %64, %66, %cst_30 {dimension_numbers = #tpu.dot_dimension_numbers<[2], [2], [0], [0], [0, 1, 0, 0, 1, 0], [1], [1]>} : vector<8x4x8xbf16>, vector<8x4x8xbf16>, vector<4x8x8xf32> -> vector<4x8x8xf32>
    "tpu.trace_stop"() : () -> ()
    %cst_31 = arith.constant dense<0xFF800000> : vector<4x8xf32>
    %70 = vector.multi_reduction <maximumf>, %69, %cst_31 [2] : vector<4x8x8xf32> to vector<4x8xf32>
    %71 = vector.shape_cast %70 : vector<4x8xf32> to vector<4x8x1xf32>
    %72 = vector.broadcast %71 : vector<4x8x1xf32> to vector<4x8x8xf32>
    %73 = arith.subf %69, %72 : vector<4x8x8xf32>
    %74 = math.exp %73 : vector<4x8x8xf32>
    %cst_32 = arith.constant dense<0.000000e+00> : vector<4x8xf32>
    %75 = vector.multi_reduction <add>, %74, %cst_32 [2] : vector<4x8x8xf32> to vector<4x8xf32>
    %76 = vector.shape_cast %75 : vector<4x8xf32> to vector<4x8x1xf32>
    %77 = tpu.reciprocal %76 {approx = true} : vector<4x8x1xf32> -> vector<4x8x1xf32>
    %78 = vector.broadcast %77 : vector<4x8x1xf32> to vector<4x8x8xf32>
    %79 = arith.mulf %74, %78 : vector<4x8x8xf32>
    %80 = arith.truncf %79 : vector<4x8x8xf32> to vector<4x8x8xbf16>
    "tpu.trace_start"() <{level = 10 : i32, message = "hnm,mhd->nhd"}> : () -> ()
    %cst_33 = arith.constant dense<0.000000e+00> : vector<4x8x8xf32>
    %81 = tpu.matmul %68, %80, %cst_33 {dimension_numbers = #tpu.dot_dimension_numbers<[0], [2], [2], [1], [0, 1, 0, 2, 1, 1], [1], [0]>} : vector<8x4x8xbf16>, vector<4x8x8xbf16>, vector<4x8x8xf32> -> vector<4x8x8xf32>
    %82 = tpu.transpose %81, [2, 0, 1] : vector<4x8x8xf32> -> vector<8x4x8xf32>
    "tpu.trace_stop"() : () -> ()
    %83 = vector.shape_cast %82 : vector<8x4x8xf32> to vector<8x32xf32>
    %84 = arith.truncf %83 : vector<8x32xf32> to vector<8x32xbf16>
    %c0_34 = arith.constant 0 : index
    %c0_35 = arith.constant 0 : index
    %85 = vector.load %arg8[%c0_34, %c0_35] : memref<32x32xbf16, #tpu.memory_space<vmem>>, vector<32x32xbf16>
    %cst_36 = arith.constant dense<0.000000e+00> : vector<8x32xf32>
    %86 = tpu.matmul %84, %85, %cst_36 {dimension_numbers = #tpu.dot_dimension_numbers<[1], [0], [0], [1], [0, 0, 1, 1], [], []>} : vector<8x32xbf16>, vector<32x32xbf16>, vector<8x32xf32> -> vector<8x32xf32>
    %c0_37 = arith.constant 0 : index
    %c0_38 = arith.constant 0 : index
    %87 = vector.load %arg9[%c0_37, %c0_38] : memref<1x32xf32, #tpu.memory_space<vmem>>, vector<1x32xf32>
    %88 = vector.broadcast %87 : vector<1x32xf32> to vector<8x32xf32>
    %89 = arith.addf %86, %88 : vector<8x32xf32>
    %c0_39 = arith.constant 0 : index
    %c0_40 = arith.constant 0 : index
    %90 = vector.load %arg10[%c0_39, %c0_40] : memref<1x32xf32, #tpu.memory_space<vmem>>, vector<1x32xf32>
    %91 = vector.broadcast %90 : vector<1x32xf32> to vector<8x32xf32>
    %92 = arith.mulf %91, %89 : vector<8x32xf32>
    %93 = arith.addf %4, %92 : vector<8x32xf32>
    %c0_41 = arith.constant 0 : index
    %c0_42 = arith.constant 0 : index
    %94 = vector.load %arg11[%c0_41, %c0_42] : memref<1x32xf32, #tpu.memory_space<vmem>>, vector<1x32xf32>
    %c0_43 = arith.constant 0 : index
    %c0_44 = arith.constant 0 : index
    %95 = vector.load %arg12[%c0_43, %c0_44] : memref<1x32xf32, #tpu.memory_space<vmem>>, vector<1x32xf32>
    %cst_45 = arith.constant dense<0.000000e+00> : vector<8xf32>
    %96 = vector.multi_reduction <add>, %93, %cst_45 [1] : vector<8x32xf32> to vector<8xf32>
    %97 = vector.shape_cast %96 : vector<8xf32> to vector<8x1xf32>
    %cst_46 = arith.constant 3.200000e+01 : f32
    %98 = vector.broadcast %cst_46 : f32 to vector<8x1xf32>
    %99 = arith.divf %97, %98 : vector<8x1xf32>
    %100 = vector.broadcast %99 : vector<8x1xf32> to vector<8x32xf32>
    %101 = arith.subf %93, %100 : vector<8x32xf32>
    %102 = arith.mulf %101, %101 : vector<8x32xf32>
    %cst_47 = arith.constant dense<0.000000e+00> : vector<8xf32>
    %103 = vector.multi_reduction <add>, %102, %cst_47 [1] : vector<8x32xf32> to vector<8xf32>
    %104 = vector.shape_cast %103 : vector<8xf32> to vector<8x1xf32>
    %cst_48 = arith.constant 3.200000e+01 : f32
    %105 = vector.broadcast %cst_48 : f32 to vector<8x1xf32>
    %106 = arith.divf %104, %105 : vector<8x1xf32>
    %107 = vector.broadcast %99 : vector<8x1xf32> to vector<8x32xf32>
    %108 = arith.subf %93, %107 : vector<8x32xf32>
    %cst_49 = arith.constant 9.99999997E-7 : f32
    %109 = vector.broadcast %cst_49 : f32 to vector<8x1xf32>
    %110 = arith.addf %106, %109 : vector<8x1xf32>
    %111 = math.rsqrt %110 : vector<8x1xf32>
    %112 = vector.broadcast %111 : vector<8x1xf32> to vector<8x32xf32>
    %113 = arith.mulf %108, %112 : vector<8x32xf32>
    %114 = vector.broadcast %94 : vector<1x32xf32> to vector<8x32xf32>
    %115 = arith.mulf %113, %114 : vector<8x32xf32>
    %116 = vector.broadcast %95 : vector<1x32xf32> to vector<8x32xf32>
    %117 = arith.addf %115, %116 : vector<8x32xf32>
    %118 = arith.truncf %117 : vector<8x32xf32> to vector<8x32xbf16>
    %c0_50 = arith.constant 0 : index
    %c0_51 = arith.constant 0 : index
    %119 = vector.load %arg13[%c0_50, %c0_51] : memref<32x128xbf16, #tpu.memory_space<vmem>>, vector<32x128xbf16>
    %cst_52 = arith.constant dense<0.000000e+00> : vector<8x128xf32>
    %120 = tpu.matmul %118, %119, %cst_52 {dimension_numbers = #tpu.dot_dimension_numbers<[1], [0], [0], [1], [0, 0, 1, 1], [], []>} : vector<8x32xbf16>, vector<32x128xbf16>, vector<8x128xf32> -> vector<8x128xf32>
    %c0_53 = arith.constant 0 : index
    %c0_54 = arith.constant 0 : index
    %121 = vector.load %arg14[%c0_53, %c0_54] : memref<1x128xf32, #tpu.memory_space<vmem>>, vector<1x128xf32>
    %122 = vector.broadcast %121 : vector<1x128xf32> to vector<8x128xf32>
    %123 = arith.addf %120, %122 : vector<8x128xf32>
    %cst_55 = arith.constant 5.000000e-01 : f32
    %124 = vector.broadcast %cst_55 : f32 to vector<8x128xf32>
    %125 = arith.mulf %124, %123 : vector<8x128xf32>
    %cst_56 = arith.constant 0.707106769 : f32
    %126 = vector.broadcast %cst_56 : f32 to vector<8x128xf32>
    %127 = arith.mulf %123, %126 : vector<8x128xf32>
    %128 = math.erf %127 : vector<8x128xf32>
    %cst_57 = arith.constant 1.000000e+00 : f32
    %129 = vector.broadcast %cst_57 : f32 to vector<8x128xf32>
    %130 = arith.addf %129, %128 : vector<8x128xf32>
    %131 = arith.mulf %125, %130 : vector<8x128xf32>
    %132 = arith.truncf %131 : vector<8x128xf32> to vector<8x128xbf16>
    %c0_58 = arith.constant 0 : index
    %c0_59 = arith.constant 0 : index
    %133 = vector.load %arg15[%c0_58, %c0_59] : memref<128x32xbf16, #tpu.memory_space<vmem>>, vector<128x32xbf16>
    %cst_60 = arith.constant dense<0.000000e+00> : vector<8x32xf32>
    %134 = tpu.matmul %132, %133, %cst_60 {dimension_numbers = #tpu.dot_dimension_numbers<[1], [0], [0], [1], [0, 0, 1, 1], [], []>} : vector<8x128xbf16>, vector<128x32xbf16>, vector<8x32xf32> -> vector<8x32xf32>
    %c0_61 = arith.constant 0 : index
    %c0_62 = arith.constant 0 : index
    %135 = vector.load %arg16[%c0_61, %c0_62] : memref<1x32xf32, #tpu.memory_space<vmem>>, vector<1x32xf32>
    %136 = vector.broadcast %135 : vector<1x32xf32> to vector<8x32xf32>
    %137 = arith.addf %134, %136 : vector<8x32xf32>
    %c0_63 = arith.constant 0 : index
    %c0_64 = arith.constant 0 : index
    %138 = vector.load %arg17[%c0_63, %c0_64] : memref<1x32xf32, #tpu.memory_space<vmem>>, vector<1x32xf32>
    %139 = vector.broadcast %138 : vector<1x32xf32> to vector<8x32xf32>
    %140 = arith.mulf %139, %137 : vector<8x32xf32>
    %141 = arith.addf %93, %140 : vector<8x32xf32>
    %c0_65 = arith.constant 0 : index
    %c0_66 = arith.constant 0 : index
    %c0_67 = arith.constant 0 : index
    %142 = vector.load %arg18[%c0_65, %c0_66, %c0_67] : memref<1x8x32xf32, #tpu.memory_space<vmem>>, vector<1x8x32xf32>
    %143 = vector.shape_cast %142 : vector<1x8x32xf32> to vector<8x32xf32>
    %144 = vector.shape_cast %141 : vector<8x32xf32> to vector<1x8x32xf32>
    tpu.vector_store %arg18[%c0_65, %c0_66, %c0_67], %144 {strides = array<i32>} : memref<1x8x32xf32, #tpu.memory_space<vmem>>, vector<1x8x32xf32>,
    return
  }
  func.func @transform_0(%arg0: i32, %arg1: i32) -> (i32, i32, i32) {
    %c0_i32 = arith.constant 0 : i32
    %c0_i32_0 = arith.constant 0 : i32
    %c0_i32_1 = arith.constant 0 : i32
    return %arg0, %c0_i32, %c0_i32_0 : i32, i32, i32
  }
  func.func @transform_1(%arg0: i32, %arg1: i32) -> (i32, i32) {
    %c0_i32 = arith.constant 0 : i32
    %c0_i32_0 = arith.constant 0 : i32
    %c0_i32_1 = arith.constant 0 : i32
    return %c0_i32, %c0_i32_0 : i32, i32
  }
  func.func @transform_2(%arg0: i32, %arg1: i32) -> (i32, i32) {
    %c0_i32 = arith.constant 0 : i32
    %c0_i32_0 = arith.constant 0 : i32
    %c0_i32_1 = arith.constant 0 : i32
    return %c0_i32, %c0_i32_0 : i32, i32
  }
  func.func @transform_3(%arg0: i32, %arg1: i32) -> (i32, i32) {
    %c0_i32 = arith.constant 0 : i32
    %c0_i32_0 = arith.constant 0 : i32
    %c0_i32_1 = arith.constant 0 : i32
    return %c0_i32, %c0_i32_0 : i32, i32
  }
  func.func @transform_4(%arg0: i32, %arg1: i32) -> (i32, i32) {
    %c0_i32 = arith.constant 0 : i32
    %c0_i32_0 = arith.constant 0 : i32
    %c0_i32_1 = arith.constant 0 : i32
    return %c0_i32, %c0_i32_0 : i32, i32
  }
  func.func @transform_5(%arg0: i32, %arg1: i32) -> (i32, i32) {
    %c0_i32 = arith.constant 0 : i32
    %c0_i32_0 = arith.constant 0 : i32
    %c0_i32_1 = arith.constant 0 : i32
    return %c0_i32, %c0_i32_0 : i32, i32
  }
  func.func @transform_6(%arg0: i32, %arg1: i32) -> (i32, i32) {
    %c0_i32 = arith.constant 0 : i32
    %c0_i32_0 = arith.constant 0 : i32
    %c0_i32_1 = arith.constant 0 : i32
    return %c0_i32, %c0_i32_0 : i32, i32
  }
  func.func @transform_7(%arg0: i32, %arg1: i32) -> (i32, i32) {
    %c0_i32 = arith.constant 0 : i32
    %c0_i32_0 = arith.constant 0 : i32
    %c0_i32_1 = arith.constant 0 : i32
    return %c0_i32, %c0_i32_0 : i32, i32
  }
  func.func @transform_8(%arg0: i32, %arg1: i32) -> (i32, i32) {
    %c0_i32 = arith.constant 0 : i32
    %c0_i32_0 = arith.constant 0 : i32
    %c0_i32_1 = arith.constant 0 : i32
    return %c0_i32, %c0_i32_0 : i32, i32
  }
  func.func @transform_9(%arg0: i32, %arg1: i32) -> (i32, i32) {
    %c0_i32 = arith.constant 0 : i32
    %c0_i32_0 = arith.constant 0 : i32
    %c0_i32_1 = arith.constant 0 : i32
    return %c0_i32, %c0_i32_0 : i32, i32
  }
  func.func @transform_10(%arg0: i32, %arg1: i32) -> (i32, i32) {
    %c0_i32 = arith.constant 0 : i32
    %c0_i32_0 = arith.constant 0 : i32
    %c0_i32_1 = arith.constant 0 : i32
    return %c0_i32, %c0_i32_0 : i32, i32
  }
  func.func @transform_11(%arg0: i32, %arg1: i32) -> (i32, i32) {
    %c0_i32 = arith.constant 0 : i32
    %c0_i32_0 = arith.constant 0 : i32
    %c0_i32_1 = arith.constant 0 : i32
    return %c0_i32, %c0_i32_0 : i32, i32
  }
  func.func @transform_12(%arg0: i32, %arg1: i32) -> (i32, i32) {
    %c0_i32 = arith.constant 0 : i32
    %c0_i32_0 = arith.constant 0 : i32
    %c0_i32_1 = arith.constant 0 : i32
    return %c0_i32, %c0_i32_0 : i32, i32
  }
  func.func @transform_13(%arg0: i32, %arg1: i32) -> (i32, i32) {
    %c0_i32 = arith.constant 0 : i32
    %c0_i32_0 = arith.constant 0 : i32
    %c0_i32_1 = arith.constant 0 : i32
    return %c0_i32, %c0_i32_0 : i32, i32
  }
  func.func @transform_14(%arg0: i32, %arg1: i32) -> (i32, i32) {
    %c0_i32 = arith.constant 0 : i32
    %c0_i32_0 = arith.constant 0 : i32
    %c0_i32_1 = arith.constant 0 : i32
    return %c0_i32, %c0_i32_0 : i32, i32
  }
  func.func @transform_15(%arg0: i32, %arg1: i32) -> (i32, i32) {
    %c0_i32 = arith.constant 0 : i32
    %c0_i32_0 = arith.constant 0 : i32
    %c0_i32_1 = arith.constant 0 : i32
    return %c0_i32, %c0_i32_0 : i32, i32
  }
  func.func @transform_16(%arg0: i32, %arg1: i32) -> (i32, i32, i32) {
    %c0_i32 = arith.constant 0 : i32
    %c0_i32_0 = arith.constant 0 : i32
    return %arg0, %arg1, %c0_i32 : i32, i32, i32
  }
}

</mosaic_0001>

<bundles_post_ra>
// kernel: tpu_custom_call.1
= control target key start
LH: loop header
LB: loop body
LE: loop exit
PB: predicated region body
PF: predicated region fallthrough
CT: control target
= control target key end

     0   :  { %s3159_s0 = inlined_call_operand.vmem [shape: f32[2,8,32], index: 0, kind: input, shape index: {}]   ;;  %s3160_s1 = inlined_call_operand.hbm [shape: f32[1,32], index: 1, kind: input, shape index: {}]   ;;  %s3161_s2 = inlined_call_operand.hbm [shape: f32[1,32], index: 2, kind: input, shape index: {}]   ;;  %s3162_s3 = inlined_call_operand.vmem [shape: bf16[32,32], index: 3, kind: input, shape index: {}]   ;;  %s3163_s4 = inlined_call_operand.vmem [shape: bf16[32,32], index: 4, kind: input, shape index: {}]   ;;  %s3164_s5 = inlined_call_operand.vmem [shape: bf16[32,32], index: 5, kind: input, shape index: {}]   ;;  %s3165_s6 = inlined_call_operand.vmem [shape: bf16[32,32], index: 6, kind: input, shape index: {}]   ;;  %s3166_s7 = inlined_call_operand.hbm [shape: f32[1,32], index: 7, kind: input, shape index: {}]   ;;  %s3167_s8 = inlined_call_operand.hbm [shape: f32[1,32], index: 8, kind: input, shape index: {}]   ;;  %s3168_s9 = inlined_call_operand.hbm [shape: f32[1,32], index: 9, kind: input, shape index: {}]   ;;  %s3169_s10 = inlined_call_operand.vmem [shape: f32[1,32], index: 10, kind: input, shape index: {}]   ;;  %s3170_s11 = inlined_call_operand.vmem [shape: bf16[32,128], index: 11, kind: input, shape index: {}]   ;;  %s3171_s12 = inlined_call_operand.vmem [shape: f32[1,128], index: 12, kind: input, shape index: {}]   ;;  %s3172_s13 = inlined_call_operand.vmem [shape: bf16[128,32], index: 13, kind: input, shape index: {}]   ;;  %s3173_s14 = inlined_call_operand.vmem [shape: f32[1,32], index: 14, kind: input, shape index: {}]   ;;  %s3174_s15 = inlined_call_operand.vmem [shape: f32[1,32], index: 15, kind: input, shape index: {}]   ;;  %s3175_s16 = inlined_call_operand.hbm [shape: f32[2,8,32], index: 16, kind: output, shape index: {}]  }
   0x1   :  { %3188 = sst [smem:[#allocation23_spill]] %s3159_s0 }
   0x2   :  { %3189 = sst [smem:[#allocation24_spill]] %s3161_s2 }
   0x3   :  { %3190 = sst [smem:[#allocation25_spill]] %s3175_s16 }
   0x4   :  { %21 = vsyncpa [#allocation3], 0 }
   0x5   :  { %22 = vsyncpa [#allocation6], 0 }
   0x6   :  { %23 = vsyncpa [#allocation9], 0 }
   0x7   :  { %24 = vsyncpa [#allocation4], 0 }
   0x8   :  { %26 = vsyncpa [#allocation4 + $0x1], 0  ;;  %s2803_s21 = smov 0   ;;  %s2805_s22 = smov 0  }
   0x9   :  { %s2807_s23 = smov 0   ;;  %s2809_s24 = smov 0  }
   0xa   :  { %s2811_s25 = smov 0   ;;  %s2813_s26 = smov 0  }
   0xb LB: > { %3191 = sst [smem:[#allocation16_spill]] %s2680_s21  ;;  %s2112_s27 = sadd.s32 4294967295, %s2700_s26   ;;  %s2700_s26 = sphi %s2813_s26, %s32_s26   ;;  %s2696_s25 = sphi %s2811_s25, %s3218_s25   ;;  %s2692_s24 = sphi %s2809_s24, %s3217_s24   ;;  %s2688_s23 = sphi %s2807_s23, %s3216_s23   ;;  %s2684_s22 = sphi %s2805_s22, %s3220_s22   ;;  %s2680_s21 = sphi %s2803_s21, %s3219_s21  }
   0xc   : > { %3192 = sst [smem:[#allocation17_spill]] %s2688_s23  ;;  %s2113_s28 = sadd.s32 4294967294, %s2700_s26  }
   0xd   : > { %3193 = sst [smem:[#allocation18_spill]] %s2696_s25  ;;  %s44_s29 = sadd.s32 1, %s2696_s25 }
   0xe   : > { %3194 = sst [smem:[#allocation19_spill]] %s2700_s26  ;;  %s394_s30 = sadd.s32 1, %s2688_s23 }
   0xf   : > { %p46_p0 = scmp.ge.s32.totalorder %s44_s29, 2  ;;  %p404_p1 = scmp.ne.s32.totalorder %s2688_s23, %s2684_s22 }
  0x10   : > { %p405_p2 = scmp.eq.s32.totalorder %s2112_s27, 1  ;;  %p410_p3 = scmp.ne.s32.totalorder %s2684_s22, %s2680_s21 }
  0x11   : > { %s3222_s29 = smov (%p46_p0, %s44_s29), 0  ;;  %p411_p5 = scmp.eq.s32.totalorder %s2113_s28, 1 }
  0x12   : > { %3195 = sst [smem:[#allocation20_spill]] %s3222_s29  ;;  %p2843_p4 = por %p405_p2, %p404_p1 }
  0x13   : > { %s389_s17 = ssub.s32 %s2696_s25, %s3222_s29  ;;  %p2114_p6 = scmp.ge.s32.totalorder %s2700_s26, 1 }
  0x14   : > { %s3196_s0 = scalar_select %p2843_p4, 1, 0 }
  0x15   : > { %p392_p7 = scmp.eq.s32.totalorder %s389_s17, 0  ;;  %p2850_p8 = por %p411_p5, %p410_p3 }
  0x16   : > { %p418_p9 = scmp.lt.s32.totalorder %s2700_s26, 3  ;;  %p2862_p11 = scmp.eq.s32.totalorder %s2112_s27, 0 }
  0x17   : > { %s3197_s18 = scalar_select %p2850_p8, 1, 0 }
  0x18   : > { %s2856_s19 = scalar_select %p392_p7, %s2688_s23, %s394_s30  }
  0x19   : > { %3198 = sst [smem:[#allocation21_spill]] %s3197_s18  ;;  %p2858_p10 = pnand %p2114_p6, %p418_p9 }
  0x1a   : > { %3199 = sst [smem:[#allocation22_spill]] %s2856_s19  ;;  %s2702_s28 = smov [#allocation5]  }
  0x1b   : > { %s3200_s20 = scalar_select %p2858_p10, 1, 0 }
  0x1c   : > { %s3201_s21 = scalar_select %p2862_p11, 1, 0 }
  0x1d   : > { %p2345_p12 = pneg %p2858_p10  ;;  %s442_s17 = sshll.u32 %s2702_s28, 4  ;;  %s443_s17 = int_to_ptr.vmem [resolvable:$true] %s442_s17 }
  0x1e   : > { %s2703_s29 = smov [#allocation8]   ;;  %s2493_s19 = scalar_lea.vmem %s443_s17, 16 }
  0x1f   : > { %s476_s25 = sshll.u32 %s2703_s29, 4  ;;  %p2870_p13 = pnand %p2862_p11, %p2345_p12  ;;  %s477_s25 = int_to_ptr.vmem [resolvable:$true] %s476_s25 }
  0x20   : > { %p2494_p1 = scmp.ne.s32.totalorder %s443_s17, %s2493_s19  ;;  %s2500_s28 = scalar_lea.vmem %s443_s17, 32 }
  0x21   : > { %p2876_p0 = pneg %p2870_p13  ;;  %p2501_p5 = scmp.lt.s32.totalorder %s443_s17, %s443_s17 }
  0x22   : > { %p2502_p6 = scmp.lt.s32.totalorder %s2500_s28, %s2493_s19 }
  0x23   : > { %p2496_p2 = pnand %p2494_p1, %p2876_p0 }
  0x24   : > { %p2503_p7 = por %p2502_p6, %p2501_p5 }
  0x25   : > { %p2497_p3 = pneg %p2496_p2 }
  0x27   : > { %p2504_p9 = pnand %p2503_p7, %p2497_p3 }
  0x29   : > { %2507 = shalt.err (!%p2504_p9)
}
  0x2a   : > { %s3204_s2 = sld [smem:[#allocation24_spill]]  ;;  %s2519_s18 = scalar_lea.vmem %s477_s25, 16 }
  0x2b   : > { %p2520_p12 = scmp.ne.s32.totalorder %s477_s25, %s2519_s18  ;;  %s2526_s26 = scalar_lea.vmem %s477_s25, 32 }
  0x2c   : > { %p2527_p1 = scmp.lt.s32.totalorder %s477_s25, %s477_s25  ;;  %p2528_p2 = scmp.lt.s32.totalorder %s2526_s26, %s2519_s18 }
  0x2d   : > { %p2522_p8 = pnand %p2520_p12, %p2876_p0 }
  0x2e   : > { %p2529_p11 = por %p2528_p2, %p2527_p1 }
  0x2f   : > { %p2523_p4 = pneg %p2522_p8 }
  0x30   : > { %2351 = dma.hbm_to_vmem [thread:$0]  (!%p2870_p13), %s3204_s2, 16, %s443_s17, [#allocation6]  }
  0x31   : > { %p2530_p10 = pnand %p2529_p11, %p2523_p4 }
  0x33   : > { %2533 = shalt.err (!%p2530_p10)
}
  0x34   : > { %2357 = dma.hbm_to_vmem [thread:$0]  (!%p2870_p13), %s3167_s8, 16, %s477_s25, [#allocation9]  }
  0x35   : > { %s2704_s23 = smov [#allocation2]   ;;  %s2705_s29 = smov [#allocation7]  }
  0x36   : > { %s431_s17 = sshll.u32 %s2704_s23, 4  ;;  %s465_s2 = sshll.u32 %s2705_s29, 4  ;;  %s432_s17 = int_to_ptr.vmem [resolvable:$true] %s431_s17  ;;  %s466_s2 = int_to_ptr.vmem [resolvable:$true] %s465_s2 }
  0x37   : > { %s2545_s16 = scalar_lea.vmem %s432_s17, 16  ;;  %s2552_s26 = scalar_lea.vmem %s432_s17, 32 }
  0x38   : > { %p2546_p8 = scmp.ne.s32.totalorder %s432_s17, %s2545_s16  ;;  %p2553_p4 = scmp.lt.s32.totalorder %s432_s17, %s432_s17 }
  0x39   : > { %p2554_p10 = scmp.lt.s32.totalorder %s2552_s26, %s2545_s16 }
  0x3a   : > { %p2548_p3 = pnand %p2546_p8, %p2876_p0 }
  0x3b   : > { %p2555_p11 = por %p2554_p10, %p2553_p4 }
  0x3c   : > { %p2549_p5 = pneg %p2548_p3 }
  0x3e   : > { %p2556_p6 = pnand %p2555_p11, %p2549_p5 }
  0x40   : > { %2559 = shalt.err (!%p2556_p6)
}
  0x41   : > { %2348 = dma.hbm_to_vmem [thread:$0]  (!%p2870_p13), %s3160_s1, 16, %s432_s17, [#allocation3]  }
  0x42   : > { %s2571_s19 = scalar_lea.vmem %s466_s2, 16  ;;  %s2578_s28 = scalar_lea.vmem %s466_s2, 32 }
  0x43   : > { %p2572_p7 = scmp.ne.s32.totalorder %s466_s2, %s2571_s19  ;;  %p2579_p1 = scmp.lt.s32.totalorder %s466_s2, %s466_s2 }
  0x44   : > { %p2580_p2 = scmp.lt.s32.totalorder %s2578_s28, %s2571_s19 }
  0x45   : > { %p2574_p9 = pnand %p2572_p7, %p2876_p0 }
  0x46   : > { %p2581_p8 = por %p2580_p2, %p2579_p1 }
  0x47   : > { %p2575_p12 = pneg %p2574_p9 }
  0x49   : > { %p2582_p3 = pnand %p2581_p8, %p2575_p12 }
  0x4b   : > { %2585 = shalt.err (!%p2582_p3)
}
  0x4c   : > { %2354 = dma.hbm_to_vmem [thread:$0]  (!%p2870_p13), %s3166_s7, 16, %s466_s2, [#allocation6]  }
  0x4d   : > { %s2706_s17 = smov [#allocation10]  }
  0x4e   : > { %s487_s29 = sshll.u32 %s2706_s17, 4  ;;  %s488_s29 = int_to_ptr.vmem [resolvable:$true] %s487_s29 }
  0x4f   : > { %s2597_s26 = scalar_lea.vmem %s488_s29, 16  ;;  %s2604_s18 = scalar_lea.vmem %s488_s29, 32 }
  0x50   : > { %p2598_p5 = scmp.ne.s32.totalorder %s488_s29, %s2597_s26  ;;  %p2605_p11 = scmp.lt.s32.totalorder %s488_s29, %s488_s29 }
  0x51   : > { %p2606_p6 = scmp.lt.s32.totalorder %s2604_s18, %s2597_s26 }
  0x52   : > { %p2600_p4 = pnand %p2598_p5, %p2876_p0 }
  0x53   : > { %p2607_p7 = por %p2606_p6, %p2605_p11 }
  0x54   : > { %p2601_p10 = pneg %p2600_p4 }
  0x56   : > { %p2608_p9 = pnand %p2607_p7, %p2601_p10 }
  0x58   : > { %2611 = shalt.err (!%p2608_p9)
}
  0x59   : > { %2360 = dma.hbm_to_vmem [thread:$0]  (!%p2870_p13), %s3168_s9, 16, %s488_s29, [#allocation9]  }
  0x5a   : > { %p3205_p12 = scmp.ne.s32.totalorder %s3200_s20, 0 }
  0x5b   : > { %p3206_p1 = scmp.ne.s32.totalorder (!%p3205_p12), %s3201_s21, 0 }
  0x5c   : > { %525 = sbr.rel (%p3205_p12) target bundleno = 2841 (0xb19), region = 84 }
  0x61   : > { %2663 = dma.done.wait (%p3206_p1), [#allocation3], 16  }
  0x62   : > { %2665 = vsyncadd (%p3206_p1), [#allocation3], 4294967280 }
  0x63   : > { %2667 = dma.done.wait (%p3206_p1), [#allocation6], 32  }
  0x64   : > { %2669 = vsyncadd (%p3206_p1), [#allocation6], 4294967264 }
  0x65   : > { %2671 = dma.done.wait (%p3206_p1), [#allocation9], 32  }
  0x66   : > { %2673 = vsyncadd (%p3206_p1), [#allocation9], 4294967264  ;;  %p590_p13 = scmp.lt.s32.totalorder %s2692_s24, 1  ;;  %s3207_s28 = sld [smem:[#allocation23_spill]]  ;;  %vm601_vm0 = vcmask 261120   ;;  %v2440_v12 = vld [vmem:[%s3162_s3 + $0x8] sm:$0xff]  }
  0x67   : > { %v2707_v13 = vmov 0.0   ;;  %vm2708_vm1 = vmmov 0   ;;  %v2441_v14 = vld [vmem:[%s3162_s3] sm:$0xff]   ;;  %v2442_v29 = vld [vmem:[%s3163_s4 + $0x8] sm:$0xff]   ;;  %s2711_s21 = smov 104   ;;  %vm919_vm2 = vcmask 1043456  }
  0x68   : > { %s591_s2 = scalar_select %p590_p13, %s2692_s24, 1  ;;  %2215 = vmatprep.subr.bf16.mxu0 %v2707_v13  ;;  %2219 = vmatprep.mubr.msk.bf16.mxu0 %vm2708_vm1, %v2707_v13  ;;  %v2129_v22 = vld [vmem:[#allocation2] ss:$0 sm:$0xff]  ;;  %v2130_v24 = vld [vmem:[#allocation5] ss:$0 sm:$0xff]  ;;  %v2444_v34 = vld [vmem:[%s3164_s5 + $0x8] sm:$0xff]  }
  0x69   : > { %2216 = vmatpush3.bf16.msra.mxu0 %v2440_v12  ;;  %2239 = vmatprep.subr.bf16.mxu1 %v2707_v13  ;;  %v2443_v32 = vld [vmem:[%s3163_s4] sm:$0xff]   ;;  %vm915_vm3 = vcmask 64512   ;;  %s2714_s18 = smov 16   ;;  %s2715_s25 = smov 8   ;;  %vm1674_vm4 = vcmask 130048   ;;  %vm1676_vm5 = vcmask 195584  }
  0x6a   : > { %s2128_s20 = sshll.u32 %s591_s2, 3  ;;  %2217 = vmatprep.subr.bf16.mxu0 %v2707_v13  ;;  %2241 = vmatprep.mubr.msk.bf16.mxu1 %vm2708_vm1, %v2707_v13  ;;  %v2445_v36 = vld [vmem:[%s3164_s5] sm:$0xff]   ;;  %s2716_s19 = smov 24  }
  0x6b   : > { %s587_s26 = sand.u32 1, %s2684_s22   ;;  %s2172_s30 = sshll.u32 %s2692_s24, 7 }
  0x6c   : > { %s593_s16 = scalar_lea.vmem %s3207_s28, %s2128_s20  ;;  %s2709_s28 = smov 112  }
  0x6d   : > { %v2934_v0 = vld [vmem:[%s593_s16] sm:$0xff]  ;;  %2218 = vmatpush3.bf16.msra.mxu0 %v2441_v14  ;;  %s2710_s16 = smov 120   ;;  %s3208_s23 = sld [smem:[#allocation25_spill]] }
  0x6e   : > { %v631_v1 = vsel %vm601_vm0, %v2934_v0, 0.0  ;;  %2223 = vmatprep.subr.bf16.mxu0 %v2707_v13  ;;  %p3210_p2 = scmp.ne.s32.totalorder %s3196_s0, 0  ;;  %s2717_s24 = smov [#allocation11]  }
  0x6f   : > { %632 = vadd.xlane.f32.xlu0 %v631_v1 }
  0x73   : > { %603 = vadd.xlane.f32.xlu0 %v631_v1  ;;  %s3209_s17 = smov %s3208_s23  ;;  %s3118_s29 = scalar_lea.hbm %s3208_s23, %s2172_s30 }
  0xf8   : > { %v633_v2 = vpop.xlane.xlu0 %632 }
  0xf9   : > { %v634_v3 = vmul.f32 0.03125, %v633_v2 }
  0xfb   : > { %v635_v4 = vsub.f32 %v2934_v0, %v634_v3 }
  0xfc   : > { %v604_v5 = vpop.xlane.xlu0 %603 }
  0xfd   : > { %v606_v6 = vmul.f32 0.03125, %v604_v5  ;;  %v636_v7 = vmul.f32 %v635_v4, %v635_v4 }
  0xff   : > { %v607_v8 = vsub.f32 %v2934_v0, %v606_v6  ;;  %v637_v9 = vsel %vm601_vm0, %v636_v7, 0.0 }
 0x100   : > { %638 = vadd.xlane.f32.xlu1 %v637_v9 }
 0x101   : > { %v608_v10 = vmul.f32 %v607_v8, %v607_v8 }
 0x103   : > { %v609_v11 = vsel %vm601_vm0, %v608_v10, 0.0 }
 0x104   : > { %610 = vadd.xlane.f32.xlu1 %v609_v11 }
 0x189   : > { %v639_v15 = vpop.xlane.xlu1 %638 }
 0x18a   : > { %v640_v16 = vmul.f32 0.03125, %v639_v15 }
 0x18c   : > { %v641_v17 = vadd.f32 1e-06, %v640_v16 }
 0x18d   : > { %v611_v18 = vpop.xlane.xlu1 %610 }
 0x18e   : > { %2458 = vrsqrt.f32 %v641_v17  ;;  %v612_v19 = vmul.f32 0.03125, %v611_v18 }
 0x190   : > { %v613_v20 = vadd.f32 1e-06, %v612_v19 }
 0x192   : > { %2460 = vrsqrt.f32 %v613_v20 }
 0x19b   : > { %v2459_v21 = vpop.eup %2458 }
 0x19c   : > { %v643_v23 = vmul.f32 %v2459_v21, %v635_v4 }
 0x19e   : > { %v644_v25 = vmul.f32 %v2129_v22, %v643_v23 }
 0x19f   : > { %v2461_v26 = vpop.eup %2460 }
 0x1a0   : > { %v615_v27 = vmul.f32 %v2461_v26, %v607_v8  ;;  %v645_v28 = vadd.f32 %v2130_v24, %v644_v25 }
 0x1a2   : > { %v622_v30 = vmul.f32 %v2129_v22, %v615_v27  ;;  %v646_v31 = vpack.c.bf16 %v645_v28, %v645_v28 }
 0x1a4   : > { %2220 = vmatmul.mubr.msk.bf16.vlgmr.msra.gmra.mxu0 %vm601_vm0, %v646_v31  ;;  %v629_v33 = vadd.f32 %v2130_v24, %v622_v30 }
 0x1a5   : > { %2224 = vmatpush3.bf16.msra.mxu0 %v2442_v29  ;;  %2227 = vmatprep.mubr.msk.bf16.mxu0 %vm2708_vm1, %v2707_v13 }
 0x1a6   : > { %2225 = vmatprep.subr.bf16.mxu0 %v2707_v13  ;;  %v630_v35 = vpack.c.bf16 %v629_v33, %v629_v33 }
 0x1a9   : > { %2226 = vmatpush3.bf16.msra.mxu0 %v2443_v32 }
 0x1aa   : > { %2231 = vmatprep.subr.bf16.mxu0 %v2707_v13 }
 0x1ac   : > { %2228 = vmatmul.mubr.msk.bf16.vlgmr.msra.gmra.mxu0 %vm601_vm0, %v630_v35 }
 0x1ad   : > { %2232 = vmatpush3.bf16.msra.mxu0 %v2444_v34  ;;  %2235 = vmatprep.mubr.msk.bf16.mxu0 %vm2708_vm1, %v2707_v13 }
 0x1ae   : > { %2233 = vmatprep.subr.bf16.mxu0 %v2707_v13 }
 0x1b1   : > { %2234 = vmatpush3.bf16.msra.mxu0 %v2445_v36 }
 0x1b2   : > { %2245 = vmatprep.subr.bf16.mxu0 %v2707_v13 }
 0x1b4   : > { %2236 = vmatmul.mubr.msk.bf16.vlgmr.msra.gmra.mxu0 %vm601_vm0, %v630_v35 }
 0x1b5   : > { %2247 = vmatprep.mubr.msk.bf16.mxu0 %vm2708_vm1, %v2707_v13 }
 0x264   : > { %v700_v37 = vpop.f32.mrf.mxu0 }
 0x265   : > { %v821_v45 = vpack.c.bf16 %v700_v37, %v700_v37 }
 0x266   : > { %v2221_v38 = vpop.f32.mrf.mxu0 }
 0x268   : > { %v703_v39 = vpop.f32.mrf.mxu0 }
 0x26a   : > { %v2222_v40 = vpop.f32.mrf.mxu0 }
 0x26c   : > { %v759_v41 = vpop.f32.mrf.mxu0 }
 0x26d   : > { %v829_v42 = vpack.c.bf16 %v759_v41, %v759_v41 }
 0x26e   : > { %v2229_v43 = vpop.f32.mrf.mxu0 }
 0x26f   : > { %834 = vrot.lane.b32.xlu1 %v829_v42, %s2709_s28  ;;  %831 = vrot.lane.b32.xlu0 %v829_v42, %s2710_s16 }
 0x270   : > { %v762_v44 = vpop.f32.mrf.mxu0 }
 0x272   : > { %v2230_v46 = vpop.f32.mrf.mxu0 }
 0x273   : > { %837 = vrot.lane.b32.xlu1 %v829_v42, %s2711_s21  ;;  %825 = vrot.lane.b32.xlu0 %v821_v45, %s2709_s28 }
 0x274   : > { %v2985_v47 = vpop.f32.mrf.mxu0 }
 0x275   : > { %v840_v23 = vpack.c.bf16 %v2985_v47, %v2985_v47 }
 0x276   : > { %v2237_v48 = vpop.f32.mrf.mxu0 }
 0x277   : > { %823 = vrot.lane.b32.xlu1 %v821_v45, %s2710_s16 }
 0x278   : > { %v818_v49 = vpop.f32.mrf.mxu0 }
 0x27a   : > { %v2238_v50 = vpop.f32.mrf.mxu0 }
 0x27b   : > { %827 = vrot.lane.b32.xlu1 %v821_v45, %s2711_s21 }
 0x291   : > { %851 = vxpose.xlu0.c.b16.start.end [1/1] (short) (narrow) %v829_v42, 16 }
 0x2e1   : > { %v835_v51 = vpop.permute.xlu1 %834  ;;  %v832_v52 = vpop.permute.xlu0 %831 }
 0x2e2   : > { %883 = vxpose.xlu0.c.b16.start.end [1/1] (short) (narrow) %v835_v51, 16  ;;  %867 = vxpose.xlu1.c.b16.start.end [1/1] (short) (narrow) %v832_v52, 16 }
 0x2e5   : > { %v838_v53 = vpop.permute.xlu1 %837  ;;  %v826_v54 = vpop.permute.xlu0 %825 }
 0x2e6   : > { %899 = vxpose.xlu0.c.b16.start.end [1/1] (short) (narrow) %v838_v53, 16 }
 0x2e9   : > { %v824_v57 = vpop.permute.xlu1 %823 }
 0x2ed   : > { %v828_v58 = vpop.permute.xlu1 %827 }
 0x2f3   : > { %v859_v55 = vpop.trf.xlu0 }
 0x2f4   : > { %v921_v56 = vsel %vm919_vm2, %v859_v55, 0 }
 0x2f5   : > { %2240 = vmatpush3.bf16.msra.mxu1 %v921_v56 }
 0x2f6   : > { %2251 = vmatprep.subr.bf16.mxu1 %v2707_v13 }
 0x2f8   : > { %2242 = vmatmul.mubr.msk.bf16.vlgmr.msra.gmra.mxu1 %vm915_vm3, %v821_v45 }
 0x2f9   : > { %2253 = vmatprep.mubr.msk.bf16.mxu1 %vm2708_vm1, %v2707_v13 }
 0x344   : > { %v875_v59 = vpop.trf.xlu1  ;;  %v891_v60 = vpop.trf.xlu0 }
 0x345   : > { %v967_v61 = vsel %vm919_vm2, %v875_v59, 0  ;;  %v1013_v62 = vsel %vm919_vm2, %v891_v60, 0 }
 0x346   : > { %2246 = vmatpush3.bf16.msra.mxu0 %v967_v61  ;;  %2252 = vmatpush3.bf16.msra.mxu1 %v1013_v62 }
 0x347   : > { %2257 = vmatprep.subr.bf16.mxu0 %v2707_v13  ;;  %2263 = vmatprep.subr.bf16.mxu1 %v2707_v13 }
 0x348   : > { %v907_v63 = vpop.trf.xlu0 }
 0x349   : > { %2248 = vmatmul.mubr.msk.bf16.vlgmr.msra.gmra.mxu0 %vm915_vm3, %v824_v57  ;;  %2254 = vmatmul.mubr.msk.bf16.vlgmr.msra.gmra.mxu1 %vm915_vm3, %v826_v54  ;;  %v1059_v1 = vsel %vm919_vm2, %v907_v63, 0 }
 0x34a   : > { %2258 = vmatpush3.bf16.msra.mxu0 %v1059_v1  ;;  %2259 = vmatprep.mubr.msk.bf16.mxu0 %vm2708_vm1, %v2707_v13 }
 0x34b   : > { %2269 = vmatprep.subr.bf16.mxu0 %v2707_v13  ;;  %2265 = vmatprep.mubr.msk.bf16.mxu1 %vm2708_vm1, %v2707_v13 }
 0x351   : > { %2260 = vmatmul.mubr.msk.bf16.vlgmr.msra.gmra.mxu0 %vm915_vm3, %v828_v58 }
 0x352   : > { %2271 = vmatprep.mubr.msk.bf16.mxu0 %vm2708_vm1, %v2707_v13 }
 0x3b8   : > { %v957_v2 = vpop.f32.mrf.mxu1 }
 0x3b9   : > { %v1101_v3 = vsel %vm915_vm3, %v957_v2, -inf }
 0x3ba   : > { %1102 = vmax.xlane.f32.xlu0 %v1101_v3  ;;  %v2243_v4 = vpop.f32.mrf.mxu1 }
 0x3bc   : > { %v960_v5 = vpop.f32.mrf.mxu1 }
 0x3be   : > { %v2244_v6 = vpop.f32.mrf.mxu1 }
 0x409   : > { %v1003_v7 = vpop.f32.mrf.mxu0  ;;  %v1049_v8 = vpop.f32.mrf.mxu1 }
 0x40a   : > { %v1107_v9 = vsel %vm915_vm3, %v1049_v8, -inf  ;;  %v1104_v10 = vsel %vm915_vm3, %v1003_v7, -inf }
 0x40b   : > { %1108 = vmax.xlane.f32.xlu0 %v1107_v9  ;;  %v2255_v11 = vpop.f32.mrf.mxu1  ;;  %1105 = vmax.xlane.f32.xlu1 %v1104_v10  ;;  %v2249_v12 = vpop.f32.mrf.mxu0 }
 0x40d   : > { %v1006_v14 = vpop.f32.mrf.mxu0  ;;  %v1052_v15 = vpop.f32.mrf.mxu1 }
 0x40f   : > { %v2250_v16 = vpop.f32.mrf.mxu0  ;;  %v2256_v17 = vpop.f32.mrf.mxu1 }
 0x411   : > { %v1095_v18 = vpop.f32.mrf.mxu0 }
 0x412   : > { %v1110_v19 = vsel %vm915_vm3, %v1095_v18, -inf }
 0x413   : > { %1111 = vmax.xlane.f32.xlu1 %v1110_v19  ;;  %v2261_v20 = vpop.f32.mrf.mxu0 }
 0x415   : > { %v1098_v21 = vpop.f32.mrf.mxu0 }
 0x417   : > { %v2262_v22 = vpop.f32.mrf.mxu0 }
 0x421   : > { %842 = vrot.lane.b32.xlu0 %v840_v23, %s2710_s16 }
 0x443   : > { %v1103_v24 = vpop.xlane.xlu0 %1102 }
 0x444   : > { %v1113_v25 = vsub.f32 %v957_v2, %v1103_v24 }
 0x446   : > { %v1117_v26 = vmul.f32 1.442695, %v1113_v25 }
 0x448   : > { %2462 = vpow2.f32 %v1117_v26  ;;  %v2712_v26 = vmov 1983009808  }
 0x455   : > { %v2463_v27 = vpop.eup %2462 }
 0x456   : > { %v1125_v28 = vsel %vm915_vm3, %v2463_v27, 0.0 }
 0x457   : > { %1126 = vadd.xlane.f32.xlu0 %v1125_v28  ;;  %v1530_v28 = vlaneseq }
 0x46d   : > { %848 = vrot.lane.b32.xlu0 %v840_v23, %s2711_s21 }
 0x494   : > { %v1109_v29 = vpop.xlane.xlu0 %1108  ;;  %v1106_v30 = vpop.xlane.xlu1 %1105 }
 0x495   : > { %v1115_v31 = vsub.f32 %v1049_v8, %v1109_v29  ;;  %v1114_v32 = vsub.f32 %v1003_v7, %v1106_v30  ;;  %v2713_v30 = vmov 1934713408  }
 0x497   : > { %v1119_v33 = vmul.f32 1.442695, %v1114_v32  ;;  %v1121_v34 = vmul.f32 1.442695, %v1115_v31  ;;  %v1560_v31 = vunpack.c.l.s4 %v2713_v30 }
 0x498   : > { %v843_v35 = vpop.permute.xlu0 %842 }
 0x499   : > { %1165 = vxpose.xlu0.c.b16.start.end [1/1] (short) (narrow) %v843_v35, 16  ;;  %2464 = vpow2.f32 %v1119_v33  ;;  %v1531_v33 = vshrl.u32 %v1530_v28, 7  ;;  %v1561_v35 = vunpack.c.0.s8 %v1560_v31 }
 0x49a   : > { %2466 = vpow2.f32 %v1121_v34 }
 0x49c   : > { %v1112_v36 = vpop.xlane.xlu1 %1111 }
 0x49d   : > { %v1116_v37 = vsub.f32 %v1095_v18, %v1112_v36 }
 0x49f   : > { %v1123_v38 = vmul.f32 1.442695, %v1116_v37 }
 0x4a1   : > { %2468 = vpow2.f32 %v1123_v38 }
 0x4a6   : > { %v2465_v39 = vpop.eup %2464 }
 0x4a7   : > { %v1128_v40 = vsel %vm915_vm3, %v2465_v39, 0.0  ;;  %v2467_v41 = vpop.eup %2466 }
 0x4a8   : > { %1129 = vadd.xlane.f32.xlu1 %v1128_v40  ;;  %v1131_v42 = vsel %vm915_vm3, %v2467_v41, 0.0 }
 0x4ac   : > { %1132 = vadd.xlane.f32.xlu1 %v1131_v42  ;;  %v1564_v42 = vsub.s32 %v1561_v35, %v1531_v33 }
 0x4ae   : > { %v2469_v43 = vpop.eup %2468 }
 0x4af   : > { %v1134_v44 = vsel %vm915_vm3, %v2469_v43, 0.0 }
 0x4b0   : > { %1135 = vadd.xlane.f32.xlu1 %v1134_v44 }
 0x4c1   : > { %845 = vrot.lane.b32.xlu1 %v840_v23, %s2709_s28 }
 0x4e0   : > { %v1127_v45 = vpop.xlane.xlu0 %1126 }
 0x4e1   : > { %2470 = vrcp.f32 %v1127_v45 }
 0x4e4   : > { %1149 = vxpose.xlu1.c.b16.start.end [1/1] (short) (narrow) %v840_v23, 16  ;;  %v849_v56 = vpop.permute.xlu0 %848 }
 0x4ee   : > { %v2471_v46 = vpop.eup %2470 }
 0x4ef   : > { %v1141_v47 = vmul.f32 %v2471_v46, %v2463_v27  ;;  %v1528_v27 = vunpack.c.l.s4 %v2712_v26 }
 0x4f1   : > { %v1145_v48 = vpack.c.bf16 %v1141_v47, %v1141_v47  ;;  %v1529_v32 = vunpack.c.0.s8 %v1528_v27  ;;  %v2446_v47 = vld [vmem:[%s3165_s6 + $0x8] sm:$0xff]  }
 0x4f3   : > { %v1217_v49 = vsel %vm915_vm3, %v1145_v48, 0  ;;  %v1532_v36 = vsub.s32 %v1529_v32, %v1531_v33 }
 0x4f4   : > { %2264 = vmatpush3.bf16.xpose.msra.mxu1 %v1217_v49 }
 0x4f5   : > { %2275 = vmatprep.subr.bf16.mxu1 %v2707_v13 }
 0x4fb   : > { %v1173_v3 = vpop.trf.xlu0 }
 0x531   : > { %v1130_v50 = vpop.xlane.xlu1 %1129 }
 0x532   : > { %2472 = vrcp.f32 %v1130_v50 }
 0x535   : > { %v1133_v51 = vpop.xlane.xlu1 %1132 }
 0x536   : > { %2474 = vrcp.f32 %v1133_v51 }
 0x539   : > { %v1136_v52 = vpop.xlane.xlu1 %1135 }
 0x53a   : > { %2476 = vrcp.f32 %v1136_v52 }
 0x53d   : > { %v846_v53 = vpop.permute.xlu1 %845 }
 0x53e   : > { %1181 = vxpose.xlu0.c.b16.start.end [1/1] (short) (narrow) %v846_v53, 16 }
 0x53f   : > { %v2473_v54 = vpop.eup %2472 }
 0x540   : > { %v1142_v55 = vmul.f32 %v2473_v54, %v2465_v39 }
 0x542   : > { %1197 = vxpose.xlu0.c.b16.start.end [1/1] (short) (narrow) %v849_v56, 16  ;;  %v1146_v57 = vpack.c.bf16 %v1142_v55, %v1142_v55  ;;  %v2447_v56 = vld [vmem:[%s3165_s6] sm:$0xff]  }
 0x543   : > { %v2475_v58 = vpop.eup %2474 }
 0x544   : > { %v1263_v59 = vsel %vm915_vm3, %v1146_v57, 0  ;;  %v1143_v60 = vmul.f32 %v2475_v58, %v2467_v41 }
 0x545   : > { %2270 = vmatpush3.bf16.xpose.msra.mxu0 %v1263_v59 }
 0x546   : > { %v1157_v61 = vpop.trf.xlu1  ;;  %v1147_v62 = vpack.c.bf16 %v1143_v60, %v1143_v60  ;;  %2281 = vmatprep.subr.bf16.mxu0 %v2707_v13 }
 0x547   : > { %v2477_v63 = vpop.eup %2476  ;;  %2266 = vmatmul.mubr.msk.bf16.vlgmr.msra.gmra.mxu1 %vm915_vm3, %v1157_v61 }
 0x548   : > { %v1309_v1 = vsel %vm915_vm3, %v1147_v62, 0  ;;  %v1144_v2 = vmul.f32 %v2477_v63, %v2469_v43  ;;  %2277 = vmatprep.mubr.msk.bf16.mxu1 %vm2708_vm1, %v2707_v13 }
 0x549   : > { %2276 = vmatpush3.bf16.xpose.msra.mxu1 %v1309_v1 }
 0x54a   : > { %v1148_v4 = vpack.c.bf16 %v1144_v2, %v1144_v2  ;;  %2287 = vmatprep.subr.bf16.mxu1 %v2707_v13 }
 0x54c   : > { %2272 = vmatmul.mubr.msk.bf16.vlgmr.msra.gmra.mxu0 %vm915_vm3, %v1173_v3  ;;  %v1355_v5 = vsel %vm915_vm3, %v1148_v4, 0 }
 0x54d   : > { %2282 = vmatpush3.bf16.xpose.msra.mxu0 %v1355_v5  ;;  %2283 = vmatprep.mubr.msk.bf16.mxu0 %vm2708_vm1, %v2707_v13 }
 0x54e   : > { %2295 = vmatprep.subr.bf16.mxu0 %v2707_v13 }
 0x5a0   : > { %v1189_v6 = vpop.trf.xlu0 }
 0x5a1   : > { %2278 = vmatmul.mubr.msk.bf16.vlgmr.msra.gmra.mxu1 %vm915_vm3, %v1189_v6 }
 0x5a2   : > { %2291 = vmatprep.mubr.msk.bf16.mxu1 %vm2708_vm1, %v2707_v13  ;;  %2288 = vmatpush3.bf16.msra.mxu1 %v2446_v47 }
 0x5a3   : > { %2289 = vmatprep.subr.bf16.mxu1 %v2707_v13 }
 0x5a4   : > { %v1205_v7 = vpop.trf.xlu0 }
 0x5a5   : > { %2284 = vmatmul.mubr.msk.bf16.vlgmr.msra.gmra.mxu0 %vm915_vm3, %v1205_v7 }
 0x5a6   : > { %2299 = vmatprep.mubr.msk.bf16.mxu0 %vm2708_vm1, %v2707_v13  ;;  %2290 = vmatpush3.bf16.msra.mxu1 %v2447_v56  ;;  %v2157_v56 = vld [vmem:[%s3171_s12] ss:$0 sm:$0xff] }
 0x5a7   : > { %2303 = vmatprep.subr.bf16.mxu1 %v2707_v13 }
 0x607   : > { %v1253_v8 = vpop.f32.mrf.mxu1 }
 0x608   : > { %1397 = vxpose.xlu1.b32.start.end [1/1] (short) (narrow) %v1253_v8, 8 }
 0x609   : > { %v2267_v9 = vpop.f32.mrf.mxu1 }
 0x60b   : > { %v1256_v10 = vpop.f32.mrf.mxu1 }
 0x60c   : > { %v1299_v11 = vpop.f32.mrf.mxu0 }
 0x60d   : > { %v2268_v12 = vpop.f32.mrf.mxu1  ;;  %1429 = vxpose.xlu0.b32.start.end [1/1] (short) (narrow) %v1299_v11, 8 }
 0x60e   : > { %v2273_v14 = vpop.f32.mrf.mxu0 }
 0x610   : > { %v1302_v15 = vpop.f32.mrf.mxu0 }
 0x612   : > { %v2274_v16 = vpop.f32.mrf.mxu0 }
 0x661   : > { %v1345_v17 = vpop.f32.mrf.mxu1 }
 0x662   : > { %1461 = vxpose.xlu0.b32.start.end [1/1] (short) (narrow) %v1345_v17, 8 }
 0x663   : > { %v2279_v18 = vpop.f32.mrf.mxu1 }
 0x665   : > { %v1348_v19 = vpop.f32.mrf.mxu1  ;;  %v1391_v20 = vpop.f32.mrf.mxu0 }
 0x666   : > { %1493 = vxpose.xlu1.b32.start.end [1/1] (short) (narrow) %v1391_v20, 8 }
 0x667   : > { %v2280_v21 = vpop.f32.mrf.mxu1  ;;  %v2285_v22 = vpop.f32.mrf.mxu0 }
 0x668   : > { %v2150_v22 = vld [vmem:[#allocation7] ss:$0 sm:$0xff] }
 0x669   : > { %v1394_v23 = vpop.f32.mrf.mxu0 }
 0x66b   : > { %v2286_v24 = vpop.f32.mrf.mxu0 }
 0x66c   : > { %v2154_v24 = vld [vmem:[#allocation8] ss:$0 sm:$0xff] }
 0x684   : > { %v1413_v29 = vpop.trf.xlu1 }
 0x689   : > { %v1445_v25 = vpop.trf.xlu0 }
 0x6de   : > { %v1477_v34 = vpop.trf.xlu0 }
 0x6df   : > { %v1525_v37 = vcombine.low %v1413_v29, %v1477_v34  ;;  %v1526_v38 = vcombine.high %v1413_v29, %v1477_v34 }
 0x6e1   : > { %v1533_v43 = vrot.slane %v1525_v37, %v1532_v36  ;;  %v1540_v44 = vrot.slane %v1526_v38, %v1532_v36  ;;  %v2448_v37 = vld [vmem:[%s3170_s11 + $0x8] sm:$0xff]   ;;  %v2450_v38 = vld [vmem:[%s3172_s13 + $0x38] sm:$0xff]  }
 0x6e2   : > { %v1509_v39 = vpop.trf.xlu1  ;;  %2296 = vmatpush3.bf16.msra.mxu0 %v2448_v37 }
 0x6e3   : > { %v1541_v40 = vcombine.low %v1445_v25, %v1509_v39  ;;  %v1542_v41 = vcombine.high %v1445_v25, %v1509_v39  ;;  %2297 = vmatprep.subr.bf16.mxu0 %v2707_v13  ;;  %v2451_v39 = vld [vmem:[%s3172_s13 + $0x30] sm:$0xff]  }
 0x6e5   : > { %v1549_v45 = vrot.slane %v1541_v40, %v1532_v36  ;;  %v1556_v46 = vrot.slane %v1542_v41, %v1532_v36 }
 0x6e7   : > { %v1557_v48 = vcombine.low %v1533_v43, %v1549_v45  ;;  %v1558_v49 = vcombine.high %v1533_v43, %v1549_v45  ;;  %v1573_v50 = vcombine.low %v1540_v44, %v1556_v46  ;;  %v1574_v51 = vcombine.high %v1540_v44, %v1556_v46  ;;  %v2155_v44 = vld [vmem:[#allocation10] ss:$0 sm:$0xff]  ;;  %v2156_v46 = vld [vmem:[%s3169_s10] ss:$0 sm:$0xff] }
 0x6e9   : > { %v1565_v52 = vrot.slane %v1557_v48, %v1564_v42  ;;  %v1572_v53 = vrot.slane %v1558_v49, %v1564_v42  ;;  %v1581_v54 = vrot.slane %v1573_v50, %v1564_v42  ;;  %v1588_v55 = vrot.slane %v1574_v51, %v1564_v42  ;;  %v2452_v50 = vld [vmem:[%s3172_s13 + $0x28] sm:$0xff]   ;;  %v2453_v51 = vld [vmem:[%s3172_s13 + $0x20] sm:$0xff]  }
 0x6eb   : > { %v1593_v57 = vcombine.low %v1565_v52, %v1572_v53  ;;  %v2148_v58 = vcombine.high %v1565_v52, %v1572_v53  ;;  %v1609_v59 = vcombine.low %v1581_v54, %v1588_v55  ;;  %v2149_v60 = vcombine.high %v1581_v54, %v1588_v55  ;;  %v2454_v52 = vld [vmem:[%s3172_s13 + $0x18] sm:$0xff]   ;;  %v2455_v53 = vld [vmem:[%s3172_s13 + $0x10] sm:$0xff]   ;;  %v2456_v54 = vld [vmem:[%s3172_s13 + $0x8] sm:$0xff]  }
 0x6ec   : > { %v2457_v55 = vld [vmem:[%s3172_s13] sm:$0xff]  }
 0x6ed   : > { %v1600_v61 = vrot.slane %v1593_v57, %v1532_v36  ;;  %v1608_v62 = vrot.slane %v2148_v58, %v1532_v36  ;;  %v1616_v63 = vrot.slane %v1609_v59, %v1532_v36  ;;  %v1624_v1 = vrot.slane %v2149_v60, %v1532_v36 }
 0x6ef   : > { %v1626_v2 = vcombine.high %v1600_v61, %v1608_v62  ;;  %v1642_v3 = vcombine.high %v1616_v63, %v1624_v1  ;;  %v1625_v4 = vcombine.low %v1600_v61, %v1608_v62  ;;  %v1641_v5 = vcombine.low %v1616_v63, %v1624_v1 }
 0x6f1   : > { %v1640_v6 = vrot.slane %v1626_v2, %v1564_v42  ;;  %v1656_v7 = vrot.slane %v1642_v3, %v1564_v42  ;;  %v1633_v8 = vrot.slane %v1625_v4, %v1564_v42  ;;  %v1649_v9 = vrot.slane %v1641_v5, %v1564_v42  ;;  %v2161_v4 = vld [vmem:[%s3173_s14] ss:$0 sm:$0xff] }
 0x6f3   : > { %v1659_v10 = vcombine.low %v1640_v6, %v1656_v7  ;;  %v1658_v11 = vcombine.high %v1633_v8, %v1649_v9  ;;  %v1657_v12 = vcombine.low %v1633_v8, %v1649_v9  ;;  %v1660_v14 = vcombine.high %v1640_v6, %v1656_v7  ;;  %v2170_v6 = vld [vmem:[%s3174_s15] ss:$0 sm:$0xff] }
 0x6f5   : > { %1666 = vrot.lane.b32.xlu1 %v1659_v10, %s2714_s18  ;;  %1662 = vrot.lane.b32.xlu0 %v1658_v11, %s2715_s25  ;;  %s2127_s18 = sshll.u32 %s587_s26, 3  ;;  %s1978_s25 = scalar_lea.sflag [#allocation4], %s587_s26 }
 0x6f6   : > { %s589_s27 = scalar_lea.vmem [#allocation11], %s2127_s18  ;;  %s2616_s18 = sshll.u32 %s2717_s24, 4  ;;  %s2617_s18 = int_to_ptr.vmem [resolvable:$false] %s2616_s18 }
 0x6f7   : > { %s1992_s28 = sshll.u32 %s589_s27, 4  ;;  %s2618_s2 = scalar_lea.vmem %s2617_s18, 256  ;;  %s1993_s28 = int_to_ptr.vmem [resolvable:$true] %s1992_s28 }
 0x6f8   : > { %p2619_p5 = scmp.lt.s32.totalorder %s1993_s28, %s2617_s18 }
 0x6f9   : > { %1670 = vrot.lane.b32.xlu1 %v1660_v14, %s2716_s19  ;;  %s2612_s19 = scalar_lea.vmem %s1993_s28, 128 }
 0x6fa   : > { %p2613_p0 = scmp.ne.s32.totalorder %s1993_s28, %s2612_s19  ;;  %p2620_p4 = scmp.lt.s32.totalorder %s2618_s2, %s2612_s19 }
 0x6fc   : > { %p2614_p8 = pnand %p2613_p0, %p3210_p2  ;;  %p2621_p10 = por %p2620_p4, %p2619_p5 }
 0x6fe   : > { %p2615_p3 = pneg %p2614_p8 }
 0x700   : > { %p2622_p11 = pnand %p2621_p10, %p2615_p3 }
 0x767   : > { %v1667_v15 = vpop.permute.xlu1 %1666  ;;  %v1663_v16 = vpop.permute.xlu0 %1662 }
 0x768   : > { %v1673_v17 = vsel %vm915_vm3, %v1657_v12, %v1663_v16 }
 0x769   : > { %v1675_v19 = vsel %vm1674_vm4, %v1673_v17, %v1667_v15 }
 0x76b   : > { %v1671_v18 = vpop.permute.xlu1 %1670 }
 0x76c   : > { %v1677_v20 = vsel %vm1676_vm5, %v1675_v19, %v1671_v18 }
 0x76d   : > { %v1678_v21 = vpack.c.bf16 %v1677_v20, %v1677_v20 }
 0x76f   : > { %2292 = vmatmul.mubr.msk.bf16.vlgmr.msra.gmra.mxu1 %vm601_vm0, %v1678_v21 }
 0x770   : > { %2319 = vmatprep.mubr.msk.bf16.mxu1 %vm2708_vm1, %v2707_v13  ;;  %2304 = vmatpush3.bf16.msra.mxu1 %v2450_v38 }
 0x771   : > { %2305 = vmatprep.subr.bf16.mxu1 %v2707_v13 }
 0x774   : > { %2306 = vmatpush3.bf16.msra.mxu1 %v2451_v39 }
 0x775   : > { %2307 = vmatprep.subr.bf16.mxu1 %v2707_v13 }
 0x778   : > { %2308 = vmatpush3.bf16.msra.mxu1 %v2452_v50 }
 0x779   : > { %2309 = vmatprep.subr.bf16.mxu1 %v2707_v13 }
 0x77c   : > { %2310 = vmatpush3.bf16.msra.mxu1 %v2453_v51 }
 0x77d   : > { %2311 = vmatprep.subr.bf16.mxu1 %v2707_v13 }
 0x780   : > { %2312 = vmatpush3.bf16.msra.mxu1 %v2454_v52 }
 0x781   : > { %2313 = vmatprep.subr.bf16.mxu1 %v2707_v13 }
 0x784   : > { %2314 = vmatpush3.bf16.msra.mxu1 %v2455_v53 }
 0x785   : > { %2315 = vmatprep.subr.bf16.mxu1 %v2707_v13 }
 0x788   : > { %2316 = vmatpush3.bf16.msra.mxu1 %v2456_v54 }
 0x789   : > { %2317 = vmatprep.subr.bf16.mxu1 %v2707_v13 }
 0x78c   : > { %2318 = vmatpush3.bf16.msra.mxu1 %v2457_v55 }
 0x82f   : > { %v1739_v23 = vpop.f32.mrf.mxu1 }
 0x830   : > { %v1740_v25 = vadd.f32 %v2150_v22, %v1739_v23 }
 0x831   : > { %v2293_v26 = vpop.f32.mrf.mxu1 }
 0x832   : > { %v1752_v27 = vmul.f32 %v2154_v24, %v1740_v25 }
 0x833   : > { %v1742_v28 = vpop.f32.mrf.mxu1 }
 0x834   : > { %v3055_v29 = vadd.f32 %v1752_v27, %v2934_v0  ;;  %v2449_v0 = vld [vmem:[%s3170_s11] sm:$0xff]  }
 0x835   : > { %v2294_v30 = vpop.f32.mrf.mxu1  ;;  %2298 = vmatpush3.bf16.msra.mxu0 %v2449_v0 }
 0x836   : > { %v1756_v31 = vsel %vm601_vm0, %v3055_v29, 0.0 }
 0x837   : > { %1757 = vadd.xlane.f32.xlu1 %v1756_v31 }
 0x8c0   : > { %v1758_v32 = vpop.xlane.xlu1 %1757 }
 0x8c1   : > { %v1759_v33 = vmul.f32 0.03125, %v1758_v32 }
 0x8c3   : > { %v1760_v34 = vsub.f32 %v3055_v29, %v1759_v33 }
 0x8c5   : > { %v1761_v35 = vmul.f32 %v1760_v34, %v1760_v34 }
 0x8c7   : > { %v1762_v36 = vsel %vm601_vm0, %v1761_v35, 0.0 }
 0x8c8   : > { %1763 = vadd.xlane.f32.xlu0 %v1762_v36 }
 0x951   : > { %v1764_v40 = vpop.xlane.xlu0 %1763 }
 0x952   : > { %v1765_v41 = vmul.f32 0.03125, %v1764_v40 }
 0x954   : > { %v1766_v42 = vadd.f32 1e-06, %v1765_v41 }
 0x956   : > { %2478 = vrsqrt.f32 %v1766_v42 }
 0x963   : > { %v2479_v43 = vpop.eup %2478 }
 0x964   : > { %v1768_v45 = vmul.f32 %v2479_v43, %v1760_v34 }
 0x966   : > { %v1775_v47 = vmul.f32 %v2155_v44, %v1768_v45 }
 0x968   : > { %v1782_v48 = vadd.f32 %v2156_v46, %v1775_v47 }
 0x96a   : > { %v1783_v49 = vpack.c.bf16 %v1782_v48, %v1782_v48 }
 0x96c   : > { %2300 = vmatmul.mubr.msk.bf16.vlgmr.msra.gmra.mxu0 %vm601_vm0, %v1783_v49 }
 0xa2c   : > { %v1844_v57 = vpop.f32.mrf.mxu0 }
 0xa2d   : > { %v1845_v58 = vadd.f32 %v2157_v56, %v1844_v57 }
 0xa2e   : > { %v2301_v59 = vpop.f32.mrf.mxu0 }
 0xa2f   : > { %v1851_v60 = vmul.f32 0.70710677, %v1845_v58  ;;  %v1850_v13 = vmul.f32 0.5, %v1845_v58 }
 0xa30   : > { %v1847_v61 = vpop.f32.mrf.mxu0 }
 0xa31   : > { %2480 = verf.f32 %v1851_v60 }
 0xa32   : > { %v2302_v62 = vpop.f32.mrf.mxu0 }
 0xa3e   : > { %v2481_v63 = vpop.eup %2480 }
 0xa3f   : > { %v1853_v1 = vadd.f32 1.0, %v2481_v63 }
 0xa41   : > { %v1854_v2 = vmul.f32 %v1853_v1, %v1850_v13 }
 0xa43   : > { %v1855_v3 = vpack.c.bf16 %v1854_v2, %v1854_v2 }
 0xa45   : > { %2320 = vmatmul.mubr.bf16.vlgmr.msra.gmra.mxu1 %v1855_v3 }
 0xb05   : > { %v1961_v5 = vpop.f32.mrf.mxu1 }
 0xb06   : > { %v1962_v7 = vadd.f32 %v2161_v4, %v1961_v5 }
 0xb07   : > { %v2321_v8 = vpop.f32.mrf.mxu1 }
 0xb08   : > { %v1974_v9 = vmul.f32 %v2170_v6, %v1962_v7 }
 0xb09   : > { %v1964_v10 = vpop.f32.mrf.mxu1 }
 0xb0a   : > { %v1975_v11 = vadd.f32 %v1974_v9, %v3055_v29 }
 0xb0b   : > { %v2322_v12 = vpop.f32.mrf.mxu1 }
 0xb0c   : > { %1976 = vst.msk [vmem:[%s589_s27] sm:$0xff] %vm601_vm0, %v1975_v11 }
 0xb0d   : > { %2625 = shalt.err (!%p2622_p11)
}
 0xb0e   : > { %s2626_s20 = scalar_lea.hbm %s3118_s29, 128  ;;  %s2630_s27 = scalar_lea.hbm %s3209_s17, 256 }
 0xb0f   : > { %p2627_p6 = scmp.ne.s32.totalorder %s3118_s29, %s2626_s20  ;;  %p2631_p12 = scmp.lt.s32.totalorder %s3118_s29, %s3209_s17 }
 0xb10   : > { %p2632_p1 = scmp.lt.s32.totalorder %s2630_s27, %s2626_s20 }
 0xb11   : > { %p2628_p7 = pnand %p2627_p6, %p3210_p2 }
 0xb12   : > { %p2633_p13 = por %p2632_p1, %p2631_p12 }
 0xb13   : > { %p2629_p9 = pneg %p2628_p7 }
 0xb15   : > { %p2634_p0 = pnand %p2633_p13, %p2629_p9 }
 0xb17   : > { %2637 = shalt.err (!%p2634_p0)
}
 0xb18   : > { %2343 = dma.vmem_to_hbm [thread:$0]  (%p3210_p2), %s1993_s28, 128, %s3118_s29, %s1978_s25  }
 0xb19 PF: > { %s3211_s23 = sld [smem:[#allocation19_spill]] }
 0xb1a   : > { %s3212_s19 = sld [smem:[#allocation16_spill]] }
 0xb1b   : > { %s3213_s24 = sld [smem:[#allocation21_spill]] }
 0xb1f   : > { %p2375_p8 = scmp.ge.s32.totalorder %s3211_s23, 2 }
 0xb20   : > { %s2004_s18 = sand.u32 1, %s3212_s19  }
 0xb21   : > { %p3214_p3 = scmp.ne.s32.totalorder %s3213_s24, 0  ;;  %s2005_s2 = scalar_lea.sflag [#allocation4], %s2004_s18 }
 0xb23   : > { %p2362_p5 = pnand %p2375_p8, %p3214_p3 }
 0xb25   : > { %p2363_p4 = pneg %p2362_p5 }
 0xb27   : > { %2675 = dma.done.wait (%p2363_p4), %s2005_s2, 128  }
 0xb28   : > { %2677 = vsyncadd (%p2363_p4), %s2005_s2, 4294967168  ;;  %s32_s26 = sadd.s32 1, %s3211_s23   ;;  %s3215_s20 = sld [smem:[#allocation17_spill]] }
 0xb29   : > { %p29_p10 = scmp.ge.s32.totalorder %s32_s26, 4   ;;  %s3216_s23 = sld [smem:[#allocation22_spill]] }
 0xb2a   : > { %s3217_s24 = sld [smem:[#allocation18_spill]]  ;;  %s3219_s21 = smov %s2684_s22 }
 0xb2b   : > { %s3218_s25 = sld [smem:[#allocation20_spill]]  ;;  %31 = sbr.rel (!%p29_p10) target bundleno = 11 (0xb), region = 141 }
 0xb2e   : > { %s3220_s22 = smov %s3215_s20 }
 0xb30   :  { %2010 = vsyncpa [#allocation3], 1 }
 0xb31   :  { %2012 = vsyncpa [#allocation3 + $0x1], 1 }
 0xb32   :  { %2013 = vsyncpa [#allocation6], 1 }
 0xb33   :  { %2014 = vsyncpa [#allocation9], 1 }
 0xb34   :  { %2015 = vsyncpa [#allocation4], 1 }
 0xb35   :  { %2017 = vsyncpa [#allocation4 + $0x1], 1 }

// kernel: tpu_custom_call.1
= control target key start
LH: loop header
LB: loop body
LE: loop exit
PB: predicated region body
PF: predicated region fallthrough
CT: control target
= control target key end

     0   :  { %s3159_s0 = inlined_call_operand.vmem [shape: f32[2,8,32], index: 0, kind: input, shape index: {}]   ;;  %s3160_s1 = inlined_call_operand.hbm [shape: f32[1,32], index: 1, kind: input, shape index: {}]   ;;  %s3161_s2 = inlined_call_operand.hbm [shape: f32[1,32], index: 2, kind: input, shape index: {}]   ;;  %s3162_s3 = inlined_call_operand.vmem [shape: bf16[32,32], index: 3, kind: input, shape index: {}]   ;;  %s3163_s4 = inlined_call_operand.vmem [shape: bf16[32,32], index: 4, kind: input, shape index: {}]   ;;  %s3164_s5 = inlined_call_operand.vmem [shape: bf16[32,32], index: 5, kind: input, shape index: {}]   ;;  %s3165_s6 = inlined_call_operand.vmem [shape: bf16[32,32], index: 6, kind: input, shape index: {}]   ;;  %s3166_s7 = inlined_call_operand.hbm [shape: f32[1,32], index: 7, kind: input, shape index: {}]   ;;  %s3167_s8 = inlined_call_operand.hbm [shape: f32[1,32], index: 8, kind: input, shape index: {}]   ;;  %s3168_s9 = inlined_call_operand.hbm [shape: f32[1,32], index: 9, kind: input, shape index: {}]   ;;  %s3169_s10 = inlined_call_operand.vmem [shape: f32[1,32], index: 10, kind: input, shape index: {}]   ;;  %s3170_s11 = inlined_call_operand.vmem [shape: bf16[32,128], index: 11, kind: input, shape index: {}]   ;;  %s3171_s12 = inlined_call_operand.vmem [shape: f32[1,128], index: 12, kind: input, shape index: {}]   ;;  %s3172_s13 = inlined_call_operand.vmem [shape: bf16[128,32], index: 13, kind: input, shape index: {}]   ;;  %s3173_s14 = inlined_call_operand.vmem [shape: f32[1,32], index: 14, kind: input, shape index: {}]   ;;  %s3174_s15 = inlined_call_operand.vmem [shape: f32[1,32], index: 15, kind: input, shape index: {}]   ;;  %s3175_s16 = inlined_call_operand.hbm [shape: f32[2,8,32], index: 16, kind: output, shape index: {}]  }
   0x1   :  { %3188 = sst [smem:[#allocation23_spill]] %s3159_s0 }
   0x2   :  { %3189 = sst [smem:[#allocation24_spill]] %s3161_s2 }
   0x3   :  { %3190 = sst [smem:[#allocation25_spill]] %s3175_s16 }
   0x4   :  { %21 = vsyncpa [#allocation3], 0 }
   0x5   :  { %22 = vsyncpa [#allocation6], 0 }
   0x6   :  { %23 = vsyncpa [#allocation9], 0 }
   0x7   :  { %24 = vsyncpa [#allocation4], 0 }
   0x8   :  { %26 = vsyncpa [#allocation4 + $0x1], 0  ;;  %s2803_s21 = smov 0   ;;  %s2805_s22 = smov 0  }
   0x9   :  { %s2807_s23 = smov 0   ;;  %s2809_s24 = smov 0  }
   0xa   :  { %s2811_s25 = smov 0   ;;  %s2813_s26 = smov 0  }
   0xb LB: > { %3191 = sst [smem:[#allocation16_spill]] %s2680_s21  ;;  %s2112_s27 = sadd.s32 4294967295, %s2700_s26   ;;  %s2700_s26 = sphi %s2813_s26, %s32_s26   ;;  %s2696_s25 = sphi %s2811_s25, %s3218_s25   ;;  %s2692_s24 = sphi %s2809_s24, %s3217_s24   ;;  %s2688_s23 = sphi %s2807_s23, %s3216_s23   ;;  %s2684_s22 = sphi %s2805_s22, %s3220_s22   ;;  %s2680_s21 = sphi %s2803_s21, %s3219_s21  }
   0xc   : > { %3192 = sst [smem:[#allocation17_spill]] %s2688_s23  ;;  %s2113_s28 = sadd.s32 4294967294, %s2700_s26  }
   0xd   : > { %3193 = sst [smem:[#allocation18_spill]] %s2696_s25  ;;  %s44_s29 = sadd.s32 1, %s2696_s25 }
   0xe   : > { %3194 = sst [smem:[#allocation19_spill]] %s2700_s26  ;;  %s394_s30 = sadd.s32 1, %s2688_s23 }
   0xf   : > { %p46_p0 = scmp.ge.s32.totalorder %s44_s29, 2  ;;  %p404_p1 = scmp.ne.s32.totalorder %s2688_s23, %s2684_s22 }
  0x10   : > { %p405_p2 = scmp.eq.s32.totalorder %s2112_s27, 1  ;;  %p410_p3 = scmp.ne.s32.totalorder %s2684_s22, %s2680_s21 }
  0x11   : > { %s3222_s29 = smov (%p46_p0, %s44_s29), 0  ;;  %p411_p5 = scmp.eq.s32.totalorder %s2113_s28, 1 }
  0x12   : > { %3195 = sst [smem:[#allocation20_spill]] %s3222_s29  ;;  %p2843_p4 = por %p405_p2, %p404_p1 }
  0x13   : > { %s389_s17 = ssub.s32 %s2696_s25, %s3222_s29  ;;  %p2114_p6 = scmp.ge.s32.totalorder %s2700_s26, 1 }
  0x14   : > { %s3196_s0 = scalar_select %p2843_p4, 1, 0 }
  0x15   : > { %p392_p7 = scmp.eq.s32.totalorder %s389_s17, 0  ;;  %p2850_p8 = por %p411_p5, %p410_p3 }
  0x16   : > { %p418_p9 = scmp.lt.s32.totalorder %s2700_s26, 3  ;;  %p2862_p11 = scmp.eq.s32.totalorder %s2112_s27, 0 }
  0x17   : > { %s3197_s18 = scalar_select %p2850_p8, 1, 0 }
  0x18   : > { %s2856_s19 = scalar_select %p392_p7, %s2688_s23, %s394_s30  }
  0x19   : > { %3198 = sst [smem:[#allocation21_spill]] %s3197_s18  ;;  %p2858_p10 = pnand %p2114_p6, %p418_p9 }
  0x1a   : > { %3199 = sst [smem:[#allocation22_spill]] %s2856_s19  ;;  %s2702_s28 = smov [#allocation5]  }
  0x1b   : > { %s3200_s20 = scalar_select %p2858_p10, 1, 0 }
  0x1c   : > { %s3201_s21 = scalar_select %p2862_p11, 1, 0 }
  0x1d   : > { %p2345_p12 = pneg %p2858_p10  ;;  %s442_s17 = sshll.u32 %s2702_s28, 4  ;;  %s443_s17 = int_to_ptr.vmem [resolvable:$true] %s442_s17 }
  0x1e   : > { %s2703_s29 = smov [#allocation8]   ;;  %s2493_s19 = scalar_lea.vmem %s443_s17, 16 }
  0x1f   : > { %s476_s25 = sshll.u32 %s2703_s29, 4  ;;  %p2870_p13 = pnand %p2862_p11, %p2345_p12  ;;  %s477_s25 = int_to_ptr.vmem [resolvable:$true] %s476_s25 }
  0x20   : > { %p2494_p1 = scmp.ne.s32.totalorder %s443_s17, %s2493_s19  ;;  %s2500_s28 = scalar_lea.vmem %s443_s17, 32 }
  0x21   : > { %p2876_p0 = pneg %p2870_p13  ;;  %p2501_p5 = scmp.lt.s32.totalorder %s443_s17, %s443_s17 }
  0x22   : > { %p2502_p6 = scmp.lt.s32.totalorder %s2500_s28, %s2493_s19 }
  0x23   : > { %p2496_p2 = pnand %p2494_p1, %p2876_p0 }
  0x24   : > { %p2503_p7 = por %p2502_p6, %p2501_p5 }
  0x25   : > { %p2497_p3 = pneg %p2496_p2 }
  0x27   : > { %p2504_p9 = pnand %p2503_p7, %p2497_p3 }
  0x29   : > { %2507 = shalt.err (!%p2504_p9)
}
  0x2a   : > { %s3204_s2 = sld [smem:[#allocation24_spill]]  ;;  %s2519_s18 = scalar_lea.vmem %s477_s25, 16 }
  0x2b   : > { %p2520_p12 = scmp.ne.s32.totalorder %s477_s25, %s2519_s18  ;;  %s2526_s26 = scalar_lea.vmem %s477_s25, 32 }
  0x2c   : > { %p2527_p1 = scmp.lt.s32.totalorder %s477_s25, %s477_s25  ;;  %p2528_p2 = scmp.lt.s32.totalorder %s2526_s26, %s2519_s18 }
  0x2d   : > { %p2522_p8 = pnand %p2520_p12, %p2876_p0 }
  0x2e   : > { %p2529_p11 = por %p2528_p2, %p2527_p1 }
  0x2f   : > { %p2523_p4 = pneg %p2522_p8 }
  0x30   : > { %2351 = dma.hbm_to_vmem [thread:$0]  (!%p2870_p13), %s3204_s2, 16, %s443_s17, [#allocation6]  }
  0x31   : > { %p2530_p10 = pnand %p2529_p11, %p2523_p4 }
  0x33   : > { %2533 = shalt.err (!%p2530_p10)
}
  0x34   : > { %2357 = dma.hbm_to_vmem [thread:$0]  (!%p2870_p13), %s3167_s8, 16, %s477_s25, [#allocation9]  }
  0x35   : > { %s2704_s23 = smov [#allocation2]   ;;  %s2705_s29 = smov [#allocation7]  }
  0x36   : > { %s431_s17 = sshll.u32 %s2704_s23, 4  ;;  %s465_s2 = sshll.u32 %s2705_s29, 4  ;;  %s432_s17 = int_to_ptr.vmem [resolvable:$true] %s431_s17  ;;  %s466_s2 = int_to_ptr.vmem [resolvable:$true] %s465_s2 }
  0x37   : > { %s2545_s16 = scalar_lea.vmem %s432_s17, 16  ;;  %s2552_s26 = scalar_lea.vmem %s432_s17, 32 }
  0x38   : > { %p2546_p8 = scmp.ne.s32.totalorder %s432_s17, %s2545_s16  ;;  %p2553_p4 = scmp.lt.s32.totalorder %s432_s17, %s432_s17 }
  0x39   : > { %p2554_p10 = scmp.lt.s32.totalorder %s2552_s26, %s2545_s16 }
  0x3a   : > { %p2548_p3 = pnand %p2546_p8, %p2876_p0 }
  0x3b   : > { %p2555_p11 = por %p2554_p10, %p2553_p4 }
  0x3c   : > { %p2549_p5 = pneg %p2548_p3 }
  0x3e   : > { %p2556_p6 = pnand %p2555_p11, %p2549_p5 }
  0x40   : > { %2559 = shalt.err (!%p2556_p6)
}
  0x41   : > { %2348 = dma.hbm_to_vmem [thread:$0]  (!%p2870_p13), %s3160_s1, 16, %s432_s17, [#allocation3]  }
  0x42   : > { %s2571_s19 = scalar_lea.vmem %s466_s2, 16  ;;  %s2578_s28 = scalar_lea.vmem %s466_s2, 32 }
  0x43   : > { %p2572_p7 = scmp.ne.s32.totalorder %s466_s2, %s2571_s19  ;;  %p2579_p1 = scmp.lt.s32.totalorder %s466_s2, %s466_s2 }
  0x44   : > { %p2580_p2 = scmp.lt.s32.totalorder %s2578_s28, %s2571_s19 }
  0x45   : > { %p2574_p9 = pnand %p2572_p7, %p2876_p0 }
  0x46   : > { %p2581_p8 = por %p2580_p2, %p2579_p1 }
  0x47   : > { %p2575_p12 = pneg %p2574_p9 }
  0x49   : > { %p2582_p3 = pnand %p2581_p8, %p2575_p12 }
  0x4b   : > { %2585 = shalt.err (!%p2582_p3)
}
  0x4c   : > { %2354 = dma.hbm_to_vmem [thread:$0]  (!%p2870_p13), %s3166_s7, 16, %s466_s2, [#allocation6]  }
  0x4d   : > { %s2706_s17 = smov [#allocation10]  }
  0x4e   : > { %s487_s29 = sshll.u32 %s2706_s17, 4  ;;  %s488_s29 = int_to_ptr.vmem [resolvable:$true] %s487_s29 }
  0x4f   : > { %s2597_s26 = scalar_lea.vmem %s488_s29, 16  ;;  %s2604_s18 = scalar_lea.vmem %s488_s29, 32 }
  0x50   : > { %p2598_p5 = scmp.ne.s32.totalorder %s488_s29, %s2597_s26  ;;  %p2605_p11 = scmp.lt.s32.totalorder %s488_s29, %s488_s29 }
  0x51   : > { %p2606_p6 = scmp.lt.s32.totalorder %s2604_s18, %s2597_s26 }
  0x52   : > { %p2600_p4 = pnand %p2598_p5, %p2876_p0 }
  0x53   : > { %p2607_p7 = por %p2606_p6, %p2605_p11 }
  0x54   : > { %p2601_p10 = pneg %p2600_p4 }
  0x56   : > { %p2608_p9 = pnand %p2607_p7, %p2601_p10 }
  0x58   : > { %2611 = shalt.err (!%p2608_p9)
}
  0x59   : > { %2360 = dma.hbm_to_vmem [thread:$0]  (!%p2870_p13), %s3168_s9, 16, %s488_s29, [#allocation9]  }
  0x5a   : > { %p3205_p12 = scmp.ne.s32.totalorder %s3200_s20, 0 }
  0x5b   : > { %p3206_p1 = scmp.ne.s32.totalorder (!%p3205_p12), %s3201_s21, 0 }
  0x5c   : > { %525 = sbr.rel (%p3205_p12) target bundleno = 2841 (0xb19), region = 84 }
  0x61   : > { %2663 = dma.done.wait (%p3206_p1), [#allocation3], 16  }
  0x62   : > { %2665 = vsyncadd (%p3206_p1), [#allocation3], 4294967280 }
  0x63   : > { %2667 = dma.done.wait (%p3206_p1), [#allocation6], 32  }
  0x64   : > { %2669 = vsyncadd (%p3206_p1), [#allocation6], 4294967264 }
  0x65   : > { %2671 = dma.done.wait (%p3206_p1), [#allocation9], 32  }
  0x66   : > { %2673 = vsyncadd (%p3206_p1), [#allocation9], 4294967264  ;;  %p590_p13 = scmp.lt.s32.totalorder %s2692_s24, 1  ;;  %s3207_s28 = sld [smem:[#allocation23_spill]]  ;;  %vm601_vm0 = vcmask 261120   ;;  %v2440_v12 = vld [vmem:[%s3162_s3 + $0x8] sm:$0xff]  }
  0x67   : > { %v2707_v13 = vmov 0.0   ;;  %vm2708_vm1 = vmmov 0   ;;  %v2441_v14 = vld [vmem:[%s3162_s3] sm:$0xff]   ;;  %v2442_v29 = vld [vmem:[%s3163_s4 + $0x8] sm:$0xff]   ;;  %s2711_s21 = smov 104   ;;  %vm919_vm2 = vcmask 1043456  }
  0x68   : > { %s591_s2 = scalar_select %p590_p13, %s2692_s24, 1  ;;  %2215 = vmatprep.subr.bf16.mxu0 %v2707_v13  ;;  %2219 = vmatprep.mubr.msk.bf16.mxu0 %vm2708_vm1, %v2707_v13  ;;  %v2129_v22 = vld [vmem:[#allocation2] ss:$0 sm:$0xff]  ;;  %v2130_v24 = vld [vmem:[#allocation5] ss:$0 sm:$0xff]  ;;  %v2444_v34 = vld [vmem:[%s3164_s5 + $0x8] sm:$0xff]  }
  0x69   : > { %2216 = vmatpush3.bf16.msra.mxu0 %v2440_v12  ;;  %2239 = vmatprep.subr.bf16.mxu1 %v2707_v13  ;;  %v2443_v32 = vld [vmem:[%s3163_s4] sm:$0xff]   ;;  %vm915_vm3 = vcmask 64512   ;;  %s2714_s18 = smov 16   ;;  %s2715_s25 = smov 8   ;;  %vm1674_vm4 = vcmask 130048   ;;  %vm1676_vm5 = vcmask 195584  }
  0x6a   : > { %s2128_s20 = sshll.u32 %s591_s2, 3  ;;  %2217 = vmatprep.subr.bf16.mxu0 %v2707_v13  ;;  %2241 = vmatprep.mubr.msk.bf16.mxu1 %vm2708_vm1, %v2707_v13  ;;  %v2445_v36 = vld [vmem:[%s3164_s5] sm:$0xff]   ;;  %s2716_s19 = smov 24  }
  0x6b   : > { %s587_s26 = sand.u32 1, %s2684_s22   ;;  %s2172_s30 = sshll.u32 %s2692_s24, 7 }
  0x6c   : > { %s593_s16 = scalar_lea.vmem %s3207_s28, %s2128_s20  ;;  %s2709_s28 = smov 112  }
  0x6d   : > { %v2934_v0 = vld [vmem:[%s593_s16] sm:$0xff]  ;;  %2218 = vmatpush3.bf16.msra.mxu0 %v2441_v14  ;;  %s2710_s16 = smov 120   ;;  %s3208_s23 = sld [smem:[#allocation25_spill]] }
  0x6e   : > { %v631_v1 = vsel %vm601_vm0, %v2934_v0, 0.0  ;;  %2223 = vmatprep.subr.bf16.mxu0 %v2707_v13  ;;  %p3210_p2 = scmp.ne.s32.totalorder %s3196_s0, 0  ;;  %s2717_s24 = smov [#allocation11]  }
  0x6f   : > { %632 = vadd.xlane.f32.xlu0 %v631_v1 }
  0x73   : > { %603 = vadd.xlane.f32.xlu0 %v631_v1  ;;  %s3209_s17 = smov %s3208_s23  ;;  %s3118_s29 = scalar_lea.hbm %s3208_s23, %s2172_s30 }
  0xf8   : > { %v633_v2 = vpop.xlane.xlu0 %632 }
  0xf9   : > { %v634_v3 = vmul.f32 0.03125, %v633_v2 }
  0xfb   : > { %v635_v4 = vsub.f32 %v2934_v0, %v634_v3 }
  0xfc   : > { %v604_v5 = vpop.xlane.xlu0 %603 }
  0xfd   : > { %v606_v6 = vmul.f32 0.03125, %v604_v5  ;;  %v636_v7 = vmul.f32 %v635_v4, %v635_v4 }
  0xff   : > { %v607_v8 = vsub.f32 %v2934_v0, %v606_v6  ;;  %v637_v9 = vsel %vm601_vm0, %v636_v7, 0.0 }
 0x100   : > { %638 = vadd.xlane.f32.xlu1 %v637_v9 }
 0x101   : > { %v608_v10 = vmul.f32 %v607_v8, %v607_v8 }
 0x103   : > { %v609_v11 = vsel %vm601_vm0, %v608_v10, 0.0 }
 0x104   : > { %610 = vadd.xlane.f32.xlu1 %v609_v11 }
 0x189   : > { %v639_v15 = vpop.xlane.xlu1 %638 }
 0x18a   : > { %v640_v16 = vmul.f32 0.03125, %v639_v15 }
 0x18c   : > { %v641_v17 = vadd.f32 1e-06, %v640_v16 }
 0x18d   : > { %v611_v18 = vpop.xlane.xlu1 %610 }
 0x18e   : > { %2458 = vrsqrt.f32 %v641_v17  ;;  %v612_v19 = vmul.f32 0.03125, %v611_v18 }
 0x190   : > { %v613_v20 = vadd.f32 1e-06, %v612_v19 }
 0x192   : > { %2460 = vrsqrt.f32 %v613_v20 }
 0x19b   : > { %v2459_v21 = vpop.eup %2458 }
 0x19c   : > { %v643_v23 = vmul.f32 %v2459_v21, %v635_v4 }
 0x19e   : > { %v644_v25 = vmul.f32 %v2129_v22, %v643_v23 }
 0x19f   : > { %v2461_v26 = vpop.eup %2460 }
 0x1a0   : > { %v615_v27 = vmul.f32 %v2461_v26, %v607_v8  ;;  %v645_v28 = vadd.f32 %v2130_v24, %v644_v25 }
 0x1a2   : > { %v622_v30 = vmul.f32 %v2129_v22, %v615_v27  ;;  %v646_v31 = vpack.c.bf16 %v645_v28, %v645_v28 }
 0x1a4   : > { %2220 = vmatmul.mubr.msk.bf16.vlgmr.msra.gmra.mxu0 %vm601_vm0, %v646_v31  ;;  %v629_v33 = vadd.f32 %v2130_v24, %v622_v30 }
 0x1a5   : > { %2224 = vmatpush3.bf16.msra.mxu0 %v2442_v29  ;;  %2227 = vmatprep.mubr.msk.bf16.mxu0 %vm2708_vm1, %v2707_v13 }
 0x1a6   : > { %2225 = vmatprep.subr.bf16.mxu0 %v2707_v13  ;;  %v630_v35 = vpack.c.bf16 %v629_v33, %v629_v33 }
 0x1a9   : > { %2226 = vmatpush3.bf16.msra.mxu0 %v2443_v32 }
 0x1aa   : > { %2231 = vmatprep.subr.bf16.mxu0 %v2707_v13 }
 0x1ac   : > { %2228 = vmatmul.mubr.msk.bf16.vlgmr.msra.gmra.mxu0 %vm601_vm0, %v630_v35 }
 0x1ad   : > { %2232 = vmatpush3.bf16.msra.mxu0 %v2444_v34  ;;  %2235 = vmatprep.mubr.msk.bf16.mxu0 %vm2708_vm1, %v2707_v13 }
 0x1ae   : > { %2233 = vmatprep.subr.bf16.mxu0 %v2707_v13 }
 0x1b1   : > { %2234 = vmatpush3.bf16.msra.mxu0 %v2445_v36 }
 0x1b2   : > { %2245 = vmatprep.subr.bf16.mxu0 %v2707_v13 }
 0x1b4   : > { %2236 = vmatmul.mubr.msk.bf16.vlgmr.msra.gmra.mxu0 %vm601_vm0, %v630_v35 }
 0x1b5   : > { %2247 = vmatprep.mubr.msk.bf16.mxu0 %vm2708_vm1, %v2707_v13 }
 0x264   : > { %v700_v37 = vpop.f32.mrf.mxu0 }
 0x265   : > { %v821_v45 = vpack.c.bf16 %v700_v37, %v700_v37 }
 0x266   : > { %v2221_v38 = vpop.f32.mrf.mxu0 }
 0x268   : > { %v703_v39 = vpop.f32.mrf.mxu0 }
 0x26a   : > { %v2222_v40 = vpop.f32.mrf.mxu0 }
 0x26c   : > { %v759_v41 = vpop.f32.mrf.mxu0 }
 0x26d   : > { %v829_v42 = vpack.c.bf16 %v759_v41, %v759_v41 }
 0x26e   : > { %v2229_v43 = vpop.f32.mrf.mxu0 }
 0x26f   : > { %834 = vrot.lane.b32.xlu1 %v829_v42, %s2709_s28  ;;  %831 = vrot.lane.b32.xlu0 %v829_v42, %s2710_s16 }
 0x270   : > { %v762_v44 = vpop.f32.mrf.mxu0 }
 0x272   : > { %v2230_v46 = vpop.f32.mrf.mxu0 }
 0x273   : > { %837 = vrot.lane.b32.xlu1 %v829_v42, %s2711_s21  ;;  %825 = vrot.lane.b32.xlu0 %v821_v45, %s2709_s28 }
 0x274   : > { %v2985_v47 = vpop.f32.mrf.mxu0 }
 0x275   : > { %v840_v23 = vpack.c.bf16 %v2985_v47, %v2985_v47 }
 0x276   : > { %v2237_v48 = vpop.f32.mrf.mxu0 }
 0x277   : > { %823 = vrot.lane.b32.xlu1 %v821_v45, %s2710_s16 }
 0x278   : > { %v818_v49 = vpop.f32.mrf.mxu0 }
 0x27a   : > { %v2238_v50 = vpop.f32.mrf.mxu0 }
 0x27b   : > { %827 = vrot.lane.b32.xlu1 %v821_v45, %s2711_s21 }
 0x291   : > { %851 = vxpose.xlu0.c.b16.start.end [1/1] (short) (narrow) %v829_v42, 16 }
 0x2e1   : > { %v835_v51 = vpop.permute.xlu1 %834  ;;  %v832_v52 = vpop.permute.xlu0 %831 }
 0x2e2   : > { %883 = vxpose.xlu0.c.b16.start.end [1/1] (short) (narrow) %v835_v51, 16  ;;  %867 = vxpose.xlu1.c.b16.start.end [1/1] (short) (narrow) %v832_v52, 16 }
 0x2e5   : > { %v838_v53 = vpop.permute.xlu1 %837  ;;  %v826_v54 = vpop.permute.xlu0 %825 }
 0x2e6   : > { %899 = vxpose.xlu0.c.b16.start.end [1/1] (short) (narrow) %v838_v53, 16 }
 0x2e9   : > { %v824_v57 = vpop.permute.xlu1 %823 }
 0x2ed   : > { %v828_v58 = vpop.permute.xlu1 %827 }
 0x2f3   : > { %v859_v55 = vpop.trf.xlu0 }
 0x2f4   : > { %v921_v56 = vsel %vm919_vm2, %v859_v55, 0 }
 0x2f5   : > { %2240 = vmatpush3.bf16.msra.mxu1 %v921_v56 }
 0x2f6   : > { %2251 = vmatprep.subr.bf16.mxu1 %v2707_v13 }
 0x2f8   : > { %2242 = vmatmul.mubr.msk.bf16.vlgmr.msra.gmra.mxu1 %vm915_vm3, %v821_v45 }
 0x2f9   : > { %2253 = vmatprep.mubr.msk.bf16.mxu1 %vm2708_vm1, %v2707_v13 }
 0x344   : > { %v875_v59 = vpop.trf.xlu1  ;;  %v891_v60 = vpop.trf.xlu0 }
 0x345   : > { %v967_v61 = vsel %vm919_vm2, %v875_v59, 0  ;;  %v1013_v62 = vsel %vm919_vm2, %v891_v60, 0 }
 0x346   : > { %2246 = vmatpush3.bf16.msra.mxu0 %v967_v61  ;;  %2252 = vmatpush3.bf16.msra.mxu1 %v1013_v62 }
 0x347   : > { %2257 = vmatprep.subr.bf16.mxu0 %v2707_v13  ;;  %2263 = vmatprep.subr.bf16.mxu1 %v2707_v13 }
 0x348   : > { %v907_v63 = vpop.trf.xlu0 }
 0x349   : > { %2248 = vmatmul.mubr.msk.bf16.vlgmr.msra.gmra.mxu0 %vm915_vm3, %v824_v57  ;;  %2254 = vmatmul.mubr.msk.bf16.vlgmr.msra.gmra.mxu1 %vm915_vm3, %v826_v54  ;;  %v1059_v1 = vsel %vm919_vm2, %v907_v63, 0 }
 0x34a   : > { %2258 = vmatpush3.bf16.msra.mxu0 %v1059_v1  ;;  %2259 = vmatprep.mubr.msk.bf16.mxu0 %vm2708_vm1, %v2707_v13 }
 0x34b   : > { %2269 = vmatprep.subr.bf16.mxu0 %v2707_v13  ;;  %2265 = vmatprep.mubr.msk.bf16.mxu1 %vm2708_vm1, %v2707_v13 }
 0x351   : > { %2260 = vmatmul.mubr.msk.bf16.vlgmr.msra.gmra.mxu0 %vm915_vm3, %v828_v58 }
 0x352   : > { %2271 = vmatprep.mubr.msk.bf16.mxu0 %vm2708_vm1, %v2707_v13 }
 0x3b8   : > { %v957_v2 = vpop.f32.mrf.mxu1 }
 0x3b9   : > { %v1101_v3 = vsel %vm915_vm3, %v957_v2, -inf }
 0x3ba   : > { %1102 = vmax.xlane.f32.xlu0 %v1101_v3  ;;  %v2243_v4 = vpop.f32.mrf.mxu1 }
 0x3bc   : > { %v960_v5 = vpop.f32.mrf.mxu1 }
 0x3be   : > { %v2244_v6 = vpop.f32.mrf.mxu1 }
 0x409   : > { %v1003_v7 = vpop.f32.mrf.mxu0  ;;  %v1049_v8 = vpop.f32.mrf.mxu1 }
 0x40a   : > { %v1107_v9 = vsel %vm915_vm3, %v1049_v8, -inf  ;;  %v1104_v10 = vsel %vm915_vm3, %v1003_v7, -inf }
 0x40b   : > { %1108 = vmax.xlane.f32.xlu0 %v1107_v9  ;;  %v2255_v11 = vpop.f32.mrf.mxu1  ;;  %1105 = vmax.xlane.f32.xlu1 %v1104_v10  ;;  %v2249_v12 = vpop.f32.mrf.mxu0 }
 0x40d   : > { %v1006_v14 = vpop.f32.mrf.mxu0  ;;  %v1052_v15 = vpop.f32.mrf.mxu1 }
 0x40f   : > { %v2250_v16 = vpop.f32.mrf.mxu0  ;;  %v2256_v17 = vpop.f32.mrf.mxu1 }
 0x411   : > { %v1095_v18 = vpop.f32.mrf.mxu0 }
 0x412   : > { %v1110_v19 = vsel %vm915_vm3, %v1095_v18, -inf }
 0x413   : > { %1111 = vmax.xlane.f32.xlu1 %v1110_v19  ;;  %v2261_v20 = vpop.f32.mrf.mxu0 }
 0x415   : > { %v1098_v21 = vpop.f32.mrf.mxu0 }
 0x417   : > { %v2262_v22 = vpop.f32.mrf.mxu0 }
 0x421   : > { %842 = vrot.lane.b32.xlu0 %v840_v23, %s2710_s16 }
 0x443   : > { %v1103_v24 = vpop.xlane.xlu0 %1102 }
 0x444   : > { %v1113_v25 = vsub.f32 %v957_v2, %v1103_v24 }
 0x446   : > { %v1117_v26 = vmul.f32 1.442695, %v1113_v25 }
 0x448   : > { %2462 = vpow2.f32 %v1117_v26  ;;  %v2712_v26 = vmov 1983009808  }
 0x455   : > { %v2463_v27 = vpop.eup %2462 }
 0x456   : > { %v1125_v28 = vsel %vm915_vm3, %v2463_v27, 0.0 }
 0x457   : > { %1126 = vadd.xlane.f32.xlu0 %v1125_v28  ;;  %v1530_v28 = vlaneseq }
 0x46d   : > { %848 = vrot.lane.b32.xlu0 %v840_v23, %s2711_s21 }
 0x494   : > { %v1109_v29 = vpop.xlane.xlu0 %1108  ;;  %v1106_v30 = vpop.xlane.xlu1 %1105 }
 0x495   : > { %v1115_v31 = vsub.f32 %v1049_v8, %v1109_v29  ;;  %v1114_v32 = vsub.f32 %v1003_v7, %v1106_v30  ;;  %v2713_v30 = vmov 1934713408  }
 0x497   : > { %v1119_v33 = vmul.f32 1.442695, %v1114_v32  ;;  %v1121_v34 = vmul.f32 1.442695, %v1115_v31  ;;  %v1560_v31 = vunpack.c.l.s4 %v2713_v30 }
 0x498   : > { %v843_v35 = vpop.permute.xlu0 %842 }
 0x499   : > { %1165 = vxpose.xlu0.c.b16.start.end [1/1] (short) (narrow) %v843_v35, 16  ;;  %2464 = vpow2.f32 %v1119_v33  ;;  %v1531_v33 = vshrl.u32 %v1530_v28, 7  ;;  %v1561_v35 = vunpack.c.0.s8 %v1560_v31 }
 0x49a   : > { %2466 = vpow2.f32 %v1121_v34 }
 0x49c   : > { %v1112_v36 = vpop.xlane.xlu1 %1111 }
 0x49d   : > { %v1116_v37 = vsub.f32 %v1095_v18, %v1112_v36 }
 0x49f   : > { %v1123_v38 = vmul.f32 1.442695, %v1116_v37 }
 0x4a1   : > { %2468 = vpow2.f32 %v1123_v38 }
 0x4a6   : > { %v2465_v39 = vpop.eup %2464 }
 0x4a7   : > { %v1128_v40 = vsel %vm915_vm3, %v2465_v39, 0.0  ;;  %v2467_v41 = vpop.eup %2466 }
 0x4a8   : > { %1129 = vadd.xlane.f32.xlu1 %v1128_v40  ;;  %v1131_v42 = vsel %vm915_vm3, %v2467_v41, 0.0 }
 0x4ac   : > { %1132 = vadd.xlane.f32.xlu1 %v1131_v42  ;;  %v1564_v42 = vsub.s32 %v1561_v35, %v1531_v33 }
 0x4ae   : > { %v2469_v43 = vpop.eup %2468 }
 0x4af   : > { %v1134_v44 = vsel %vm915_vm3, %v2469_v43, 0.0 }
 0x4b0   : > { %1135 = vadd.xlane.f32.xlu1 %v1134_v44 }
 0x4c1   : > { %845 = vrot.lane.b32.xlu1 %v840_v23, %s2709_s28 }
 0x4e0   : > { %v1127_v45 = vpop.xlane.xlu0 %1126 }
 0x4e1   : > { %2470 = vrcp.f32 %v1127_v45 }
 0x4e4   : > { %1149 = vxpose.xlu1.c.b16.start.end [1/1] (short) (narrow) %v840_v23, 16  ;;  %v849_v56 = vpop.permute.xlu0 %848 }
 0x4ee   : > { %v2471_v46 = vpop.eup %2470 }
 0x4ef   : > { %v1141_v47 = vmul.f32 %v2471_v46, %v2463_v27  ;;  %v1528_v27 = vunpack.c.l.s4 %v2712_v26 }
 0x4f1   : > { %v1145_v48 = vpack.c.bf16 %v1141_v47, %v1141_v47  ;;  %v1529_v32 = vunpack.c.0.s8 %v1528_v27  ;;  %v2446_v47 = vld [vmem:[%s3165_s6 + $0x8] sm:$0xff]  }
 0x4f3   : > { %v1217_v49 = vsel %vm915_vm3, %v1145_v48, 0  ;;  %v1532_v36 = vsub.s32 %v1529_v32, %v1531_v33 }
 0x4f4   : > { %2264 = vmatpush3.bf16.xpose.msra.mxu1 %v1217_v49 }
 0x4f5   : > { %2275 = vmatprep.subr.bf16.mxu1 %v2707_v13 }
 0x4fb   : > { %v1173_v3 = vpop.trf.xlu0 }
 0x531   : > { %v1130_v50 = vpop.xlane.xlu1 %1129 }
 0x532   : > { %2472 = vrcp.f32 %v1130_v50 }
 0x535   : > { %v1133_v51 = vpop.xlane.xlu1 %1132 }
 0x536   : > { %2474 = vrcp.f32 %v1133_v51 }
 0x539   : > { %v1136_v52 = vpop.xlane.xlu1 %1135 }
 0x53a   : > { %2476 = vrcp.f32 %v1136_v52 }
 0x53d   : > { %v846_v53 = vpop.permute.xlu1 %845 }
 0x53e   : > { %1181 = vxpose.xlu0.c.b16.start.end [1/1] (short) (narrow) %v846_v53, 16 }
 0x53f   : > { %v2473_v54 = vpop.eup %2472 }
 0x540   : > { %v1142_v55 = vmul.f32 %v2473_v54, %v2465_v39 }
 0x542   : > { %1197 = vxpose.xlu0.c.b16.start.end [1/1] (short) (narrow) %v849_v56, 16  ;;  %v1146_v57 = vpack.c.bf16 %v1142_v55, %v1142_v55  ;;  %v2447_v56 = vld [vmem:[%s3165_s6] sm:$0xff]  }
 0x543   : > { %v2475_v58 = vpop.eup %2474 }
 0x544   : > { %v1263_v59 = vsel %vm915_vm3, %v1146_v57, 0  ;;  %v1143_v60 = vmul.f32 %v2475_v58, %v2467_v41 }
 0x545   : > { %2270 = vmatpush3.bf16.xpose.msra.mxu0 %v1263_v59 }
 0x546   : > { %v1157_v61 = vpop.trf.xlu1  ;;  %v1147_v62 = vpack.c.bf16 %v1143_v60, %v1143_v60  ;;  %2281 = vmatprep.subr.bf16.mxu0 %v2707_v13 }
 0x547   : > { %v2477_v63 = vpop.eup %2476  ;;  %2266 = vmatmul.mubr.msk.bf16.vlgmr.msra.gmra.mxu1 %vm915_vm3, %v1157_v61 }
 0x548   : > { %v1309_v1 = vsel %vm915_vm3, %v1147_v62, 0  ;;  %v1144_v2 = vmul.f32 %v2477_v63, %v2469_v43  ;;  %2277 = vmatprep.mubr.msk.bf16.mxu1 %vm2708_vm1, %v2707_v13 }
 0x549   : > { %2276 = vmatpush3.bf16.xpose.msra.mxu1 %v1309_v1 }
 0x54a   : > { %v1148_v4 = vpack.c.bf16 %v1144_v2, %v1144_v2  ;;  %2287 = vmatprep.subr.bf16.mxu1 %v2707_v13 }
 0x54c   : > { %2272 = vmatmul.mubr.msk.bf16.vlgmr.msra.gmra.mxu0 %vm915_vm3, %v1173_v3  ;;  %v1355_v5 = vsel %vm915_vm3, %v1148_v4, 0 }
 0x54d   : > { %2282 = vmatpush3.bf16.xpose.msra.mxu0 %v1355_v5  ;;  %2283 = vmatprep.mubr.msk.bf16.mxu0 %vm2708_vm1, %v2707_v13 }
 0x54e   : > { %2295 = vmatprep.subr.bf16.mxu0 %v2707_v13 }
 0x5a0   : > { %v1189_v6 = vpop.trf.xlu0 }
 0x5a1   : > { %2278 = vmatmul.mubr.msk.bf16.vlgmr.msra.gmra.mxu1 %vm915_vm3, %v1189_v6 }
 0x5a2   : > { %2291 = vmatprep.mubr.msk.bf16.mxu1 %vm2708_vm1, %v2707_v13  ;;  %2288 = vmatpush3.bf16.msra.mxu1 %v2446_v47 }
 0x5a3   : > { %2289 = vmatprep.subr.bf16.mxu1 %v2707_v13 }
 0x5a4   : > { %v1205_v7 = vpop.trf.xlu0 }
 0x5a5   : > { %2284 = vmatmul.mubr.msk.bf16.vlgmr.msra.gmra.mxu0 %vm915_vm3, %v1205_v7 }
 0x5a6   : > { %2299 = vmatprep.mubr.msk.bf16.mxu0 %vm2708_vm1, %v2707_v13  ;;  %2290 = vmatpush3.bf16.msra.mxu1 %v2447_v56  ;;  %v2157_v56 = vld [vmem:[%s3171_s12] ss:$0 sm:$0xff] }
 0x5a7   : > { %2303 = vmatprep.subr.bf16.mxu1 %v2707_v13 }
 0x607   : > { %v1253_v8 = vpop.f32.mrf.mxu1 }
 0x608   : > { %1397 = vxpose.xlu1.b32.start.end [1/1] (short) (narrow) %v1253_v8, 8 }
 0x609   : > { %v2267_v9 = vpop.f32.mrf.mxu1 }
 0x60b   : > { %v1256_v10 = vpop.f32.mrf.mxu1 }
 0x60c   : > { %v1299_v11 = vpop.f32.mrf.mxu0 }
 0x60d   : > { %v2268_v12 = vpop.f32.mrf.mxu1  ;;  %1429 = vxpose.xlu0.b32.start.end [1/1] (short) (narrow) %v1299_v11, 8 }
 0x60e   : > { %v2273_v14 = vpop.f32.mrf.mxu0 }
 0x610   : > { %v1302_v15 = vpop.f32.mrf.mxu0 }
 0x612   : > { %v2274_v16 = vpop.f32.mrf.mxu0 }
 0x661   : > { %v1345_v17 = vpop.f32.mrf.mxu1 }
 0x662   : > { %1461 = vxpose.xlu0.b32.start.end [1/1] (short) (narrow) %v1345_v17, 8 }
 0x663   : > { %v2279_v18 = vpop.f32.mrf.mxu1 }
 0x665   : > { %v1348_v19 = vpop.f32.mrf.mxu1  ;;  %v1391_v20 = vpop.f32.mrf.mxu0 }
 0x666   : > { %1493 = vxpose.xlu1.b32.start.end [1/1] (short) (narrow) %v1391_v20, 8 }
 0x667   : > { %v2280_v21 = vpop.f32.mrf.mxu1  ;;  %v2285_v22 = vpop.f32.mrf.mxu0 }
 0x668   : > { %v2150_v22 = vld [vmem:[#allocation7] ss:$0 sm:$0xff] }
 0x669   : > { %v1394_v23 = vpop.f32.mrf.mxu0 }
 0x66b   : > { %v2286_v24 = vpop.f32.mrf.mxu0 }
 0x66c   : > { %v2154_v24 = vld [vmem:[#allocation8] ss:$0 sm:$0xff] }
 0x684   : > { %v1413_v29 = vpop.trf.xlu1 }
 0x689   : > { %v1445_v25 = vpop.trf.xlu0 }
 0x6de   : > { %v1477_v34 = vpop.trf.xlu0 }
 0x6df   : > { %v1525_v37 = vcombine.low %v1413_v29, %v1477_v34  ;;  %v1526_v38 = vcombine.high %v1413_v29, %v1477_v34 }
 0x6e1   : > { %v1533_v43 = vrot.slane %v1525_v37, %v1532_v36  ;;  %v1540_v44 = vrot.slane %v1526_v38, %v1532_v36  ;;  %v2448_v37 = vld [vmem:[%s3170_s11 + $0x8] sm:$0xff]   ;;  %v2450_v38 = vld [vmem:[%s3172_s13 + $0x38] sm:$0xff]  }
 0x6e2   : > { %v1509_v39 = vpop.trf.xlu1  ;;  %2296 = vmatpush3.bf16.msra.mxu0 %v2448_v37 }
 0x6e3   : > { %v1541_v40 = vcombine.low %v1445_v25, %v1509_v39  ;;  %v1542_v41 = vcombine.high %v1445_v25, %v1509_v39  ;;  %2297 = vmatprep.subr.bf16.mxu0 %v2707_v13  ;;  %v2451_v39 = vld [vmem:[%s3172_s13 + $0x30] sm:$0xff]  }
 0x6e5   : > { %v1549_v45 = vrot.slane %v1541_v40, %v1532_v36  ;;  %v1556_v46 = vrot.slane %v1542_v41, %v1532_v36 }
 0x6e7   : > { %v1557_v48 = vcombine.low %v1533_v43, %v1549_v45  ;;  %v1558_v49 = vcombine.high %v1533_v43, %v1549_v45  ;;  %v1573_v50 = vcombine.low %v1540_v44, %v1556_v46  ;;  %v1574_v51 = vcombine.high %v1540_v44, %v1556_v46  ;;  %v2155_v44 = vld [vmem:[#allocation10] ss:$0 sm:$0xff]  ;;  %v2156_v46 = vld [vmem:[%s3169_s10] ss:$0 sm:$0xff] }
 0x6e9   : > { %v1565_v52 = vrot.slane %v1557_v48, %v1564_v42  ;;  %v1572_v53 = vrot.slane %v1558_v49, %v1564_v42  ;;  %v1581_v54 = vrot.slane %v1573_v50, %v1564_v42  ;;  %v1588_v55 = vrot.slane %v1574_v51, %v1564_v42  ;;  %v2452_v50 = vld [vmem:[%s3172_s13 + $0x28] sm:$0xff]   ;;  %v2453_v51 = vld [vmem:[%s3172_s13 + $0x20] sm:$0xff]  }
 0x6eb   : > { %v1593_v57 = vcombine.low %v1565_v52, %v1572_v53  ;;  %v2148_v58 = vcombine.high %v1565_v52, %v1572_v53  ;;  %v1609_v59 = vcombine.low %v1581_v54, %v1588_v55  ;;  %v2149_v60 = vcombine.high %v1581_v54, %v1588_v55  ;;  %v2454_v52 = vld [vmem:[%s3172_s13 + $0x18] sm:$0xff]   ;;  %v2455_v53 = vld [vmem:[%s3172_s13 + $0x10] sm:$0xff]   ;;  %v2456_v54 = vld [vmem:[%s3172_s13 + $0x8] sm:$0xff]  }
 0x6ec   : > { %v2457_v55 = vld [vmem:[%s3172_s13] sm:$0xff]  }
 0x6ed   : > { %v1600_v61 = vrot.slane %v1593_v57, %v1532_v36  ;;  %v1608_v62 = vrot.slane %v2148_v58, %v1532_v36  ;;  %v1616_v63 = vrot.slane %v1609_v59, %v1532_v36  ;;  %v1624_v1 = vrot.slane %v2149_v60, %v1532_v36 }
 0x6ef   : > { %v1626_v2 = vcombine.high %v1600_v61, %v1608_v62  ;;  %v1642_v3 = vcombine.high %v1616_v63, %v1624_v1  ;;  %v1625_v4 = vcombine.low %v1600_v61, %v1608_v62  ;;  %v1641_v5 = vcombine.low %v1616_v63, %v1624_v1 }
 0x6f1   : > { %v1640_v6 = vrot.slane %v1626_v2, %v1564_v42  ;;  %v1656_v7 = vrot.slane %v1642_v3, %v1564_v42  ;;  %v1633_v8 = vrot.slane %v1625_v4, %v1564_v42  ;;  %v1649_v9 = vrot.slane %v1641_v5, %v1564_v42  ;;  %v2161_v4 = vld [vmem:[%s3173_s14] ss:$0 sm:$0xff] }
 0x6f3   : > { %v1659_v10 = vcombine.low %v1640_v6, %v1656_v7  ;;  %v1658_v11 = vcombine.high %v1633_v8, %v1649_v9  ;;  %v1657_v12 = vcombine.low %v1633_v8, %v1649_v9  ;;  %v1660_v14 = vcombine.high %v1640_v6, %v1656_v7  ;;  %v2170_v6 = vld [vmem:[%s3174_s15] ss:$0 sm:$0xff] }
 0x6f5   : > { %1666 = vrot.lane.b32.xlu1 %v1659_v10, %s2714_s18  ;;  %1662 = vrot.lane.b32.xlu0 %v1658_v11, %s2715_s25  ;;  %s2127_s18 = sshll.u32 %s587_s26, 3  ;;  %s1978_s25 = scalar_lea.sflag [#allocation4], %s587_s26 }
 0x6f6   : > { %s589_s27 = scalar_lea.vmem [#allocation11], %s2127_s18  ;;  %s2616_s18 = sshll.u32 %s2717_s24, 4  ;;  %s2617_s18 = int_to_ptr.vmem [resolvable:$false] %s2616_s18 }
 0x6f7   : > { %s1992_s28 = sshll.u32 %s589_s27, 4  ;;  %s2618_s2 = scalar_lea.vmem %s2617_s18, 256  ;;  %s1993_s28 = int_to_ptr.vmem [resolvable:$true] %s1992_s28 }
 0x6f8   : > { %p2619_p5 = scmp.lt.s32.totalorder %s1993_s28, %s2617_s18 }
 0x6f9   : > { %1670 = vrot.lane.b32.xlu1 %v1660_v14, %s2716_s19  ;;  %s2612_s19 = scalar_lea.vmem %s1993_s28, 128 }
 0x6fa   : > { %p2613_p0 = scmp.ne.s32.totalorder %s1993_s28, %s2612_s19  ;;  %p2620_p4 = scmp.lt.s32.totalorder %s2618_s2, %s2612_s19 }
 0x6fc   : > { %p2614_p8 = pnand %p2613_p0, %p3210_p2  ;;  %p2621_p10 = por %p2620_p4, %p2619_p5 }
 0x6fe   : > { %p2615_p3 = pneg %p2614_p8 }
 0x700   : > { %p2622_p11 = pnand %p2621_p10, %p2615_p3 }
 0x767   : > { %v1667_v15 = vpop.permute.xlu1 %1666  ;;  %v1663_v16 = vpop.permute.xlu0 %1662 }
 0x768   : > { %v1673_v17 = vsel %vm915_vm3, %v1657_v12, %v1663_v16 }
 0x769   : > { %v1675_v19 = vsel %vm1674_vm4, %v1673_v17, %v1667_v15 }
 0x76b   : > { %v1671_v18 = vpop.permute.xlu1 %1670 }
 0x76c   : > { %v1677_v20 = vsel %vm1676_vm5, %v1675_v19, %v1671_v18 }
 0x76d   : > { %v1678_v21 = vpack.c.bf16 %v1677_v20, %v1677_v20 }
 0x76f   : > { %2292 = vmatmul.mubr.msk.bf16.vlgmr.msra.gmra.mxu1 %vm601_vm0, %v1678_v21 }
 0x770   : > { %2319 = vmatprep.mubr.msk.bf16.mxu1 %vm2708_vm1, %v2707_v13  ;;  %2304 = vmatpush3.bf16.msra.mxu1 %v2450_v38 }
 0x771   : > { %2305 = vmatprep.subr.bf16.mxu1 %v2707_v13 }
 0x774   : > { %2306 = vmatpush3.bf16.msra.mxu1 %v2451_v39 }
 0x775   : > { %2307 = vmatprep.subr.bf16.mxu1 %v2707_v13 }
 0x778   : > { %2308 = vmatpush3.bf16.msra.mxu1 %v2452_v50 }
 0x779   : > { %2309 = vmatprep.subr.bf16.mxu1 %v2707_v13 }
 0x77c   : > { %2310 = vmatpush3.bf16.msra.mxu1 %v2453_v51 }
 0x77d   : > { %2311 = vmatprep.subr.bf16.mxu1 %v2707_v13 }
 0x780   : > { %2312 = vmatpush3.bf16.msra.mxu1 %v2454_v52 }
 0x781   : > { %2313 = vmatprep.subr.bf16.mxu1 %v2707_v13 }
 0x784   : > { %2314 = vmatpush3.bf16.msra.mxu1 %v2455_v53 }
 0x785   : > { %2315 = vmatprep.subr.bf16.mxu1 %v2707_v13 }
 0x788   : > { %2316 = vmatpush3.bf16.msra.mxu1 %v2456_v54 }
 0x789   : > { %2317 = vmatprep.subr.bf16.mxu1 %v2707_v13 }
 0x78c   : > { %2318 = vmatpush3.bf16.msra.mxu1 %v2457_v55 }
 0x82f   : > { %v1739_v23 = vpop.f32.mrf.mxu1 }
 0x830   : > { %v1740_v25 = vadd.f32 %v2150_v22, %v1739_v23 }
 0x831   : > { %v2293_v26 = vpop.f32.mrf.mxu1 }
 0x832   : > { %v1752_v27 = vmul.f32 %v2154_v24, %v1740_v25 }
 0x833   : > { %v1742_v28 = vpop.f32.mrf.mxu1 }
 0x834   : > { %v3055_v29 = vadd.f32 %v1752_v27, %v2934_v0  ;;  %v2449_v0 = vld [vmem:[%s3170_s11] sm:$0xff]  }
 0x835   : > { %v2294_v30 = vpop.f32.mrf.mxu1  ;;  %2298 = vmatpush3.bf16.msra.mxu0 %v2449_v0 }
 0x836   : > { %v1756_v31 = vsel %vm601_vm0, %v3055_v29, 0.0 }
 0x837   : > { %1757 = vadd.xlane.f32.xlu1 %v1756_v31 }
 0x8c0   : > { %v1758_v32 = vpop.xlane.xlu1 %1757 }
 0x8c1   : > { %v1759_v33 = vmul.f32 0.03125, %v1758_v32 }
 0x8c3   : > { %v1760_v34 = vsub.f32 %v3055_v29, %v1759_v33 }
 0x8c5   : > { %v1761_v35 = vmul.f32 %v1760_v34, %v1760_v34 }
 0x8c7   : > { %v1762_v36 = vsel %vm601_vm0, %v1761_v35, 0.0 }
 0x8c8   : > { %1763 = vadd.xlane.f32.xlu0 %v1762_v36 }
 0x951   : > { %v1764_v40 = vpop.xlane.xlu0 %1763 }
 0x952   : > { %v1765_v41 = vmul.f32 0.03125, %v1764_v40 }
 0x954   : > { %v1766_v42 = vadd.f32 1e-06, %v1765_v41 }
 0x956   : > { %2478 = vrsqrt.f32 %v1766_v42 }
 0x963   : > { %v2479_v43 = vpop.eup %2478 }
 0x964   : > { %v1768_v45 = vmul.f32 %v2479_v43, %v1760_v34 }
 0x966   : > { %v1775_v47 = vmul.f32 %v2155_v44, %v1768_v45 }
 0x968   : > { %v1782_v48 = vadd.f32 %v2156_v46, %v1775_v47 }
 0x96a   : > { %v1783_v49 = vpack.c.bf16 %v1782_v48, %v1782_v48 }
 0x96c   : > { %2300 = vmatmul.mubr.msk.bf16.vlgmr.msra.gmra.mxu0 %vm601_vm0, %v1783_v49 }
 0xa2c   : > { %v1844_v57 = vpop.f32.mrf.mxu0 }
 0xa2d   : > { %v1845_v58 = vadd.f32 %v2157_v56, %v1844_v57 }
 0xa2e   : > { %v2301_v59 = vpop.f32.mrf.mxu0 }
 0xa2f   : > { %v1851_v60 = vmul.f32 0.70710677, %v1845_v58  ;;  %v1850_v13 = vmul.f32 0.5, %v1845_v58 }
 0xa30   : > { %v1847_v61 = vpop.f32.mrf.mxu0 }
 0xa31   : > { %2480 = verf.f32 %v1851_v60 }
 0xa32   : > { %v2302_v62 = vpop.f32.mrf.mxu0 }
 0xa3e   : > { %v2481_v63 = vpop.eup %2480 }
 0xa3f   : > { %v1853_v1 = vadd.f32 1.0, %v2481_v63 }
 0xa41   : > { %v1854_v2 = vmul.f32 %v1853_v1, %v1850_v13 }
 0xa43   : > { %v1855_v3 = vpack.c.bf16 %v1854_v2, %v1854_v2 }
 0xa45   : > { %2320 = vmatmul.mubr.bf16.vlgmr.msra.gmra.mxu1 %v1855_v3 }
 0xb05   : > { %v1961_v5 = vpop.f32.mrf.mxu1 }
 0xb06   : > { %v1962_v7 = vadd.f32 %v2161_v4, %v1961_v5 }
 0xb07   : > { %v2321_v8 = vpop.f32.mrf.mxu1 }
 0xb08   : > { %v1974_v9 = vmul.f32 %v2170_v6, %v1962_v7 }
 0xb09   : > { %v1964_v10 = vpop.f32.mrf.mxu1 }
 0xb0a   : > { %v1975_v11 = vadd.f32 %v1974_v9, %v3055_v29 }
 0xb0b   : > { %v2322_v12 = vpop.f32.mrf.mxu1 }
 0xb0c   : > { %1976 = vst.msk [vmem:[%s589_s27] sm:$0xff] %vm601_vm0, %v1975_v11 }
 0xb0d   : > { %2625 = shalt.err (!%p2622_p11)
}
 0xb0e   : > { %s2626_s20 = scalar_lea.hbm %s3118_s29, 128  ;;  %s2630_s27 = scalar_lea.hbm %s3209_s17, 256 }
 0xb0f   : > { %p2627_p6 = scmp.ne.s32.totalorder %s3118_s29, %s2626_s20  ;;  %p2631_p12 = scmp.lt.s32.totalorder %s3118_s29, %s3209_s17 }
 0xb10   : > { %p2632_p1 = scmp.lt.s32.totalorder %s2630_s27, %s2626_s20 }
 0xb11   : > { %p2628_p7 = pnand %p2627_p6, %p3210_p2 }
 0xb12   : > { %p2633_p13 = por %p2632_p1, %p2631_p12 }
 0xb13   : > { %p2629_p9 = pneg %p2628_p7 }
 0xb15   : > { %p2634_p0 = pnand %p2633_p13, %p2629_p9 }
 0xb17   : > { %2637 = shalt.err (!%p2634_p0)
}
 0xb18   : > { %2343 = dma.vmem_to_hbm [thread:$0]  (%p3210_p2), %s1993_s28, 128, %s3118_s29, %s1978_s25  }
 0xb19 PF: > { %s3211_s23 = sld [smem:[#allocation19_spill]] }
 0xb1a   : > { %s3212_s19 = sld [smem:[#allocation16_spill]] }
 0xb1b   : > { %s3213_s24 = sld [smem:[#allocation21_spill]] }
 0xb1f   : > { %p2375_p8 = scmp.ge.s32.totalorder %s3211_s23, 2 }
 0xb20   : > { %s2004_s18 = sand.u32 1, %s3212_s19  }
 0xb21   : > { %p3214_p3 = scmp.ne.s32.totalorder %s3213_s24, 0  ;;  %s2005_s2 = scalar_lea.sflag [#allocation4], %s2004_s18 }
 0xb23   : > { %p2362_p5 = pnand %p2375_p8, %p3214_p3 }
 0xb25   : > { %p2363_p4 = pneg %p2362_p5 }
 0xb27   : > { %2675 = dma.done.wait (%p2363_p4), %s2005_s2, 128  }
 0xb28   : > { %2677 = vsyncadd (%p2363_p4), %s2005_s2, 4294967168  ;;  %s32_s26 = sadd.s32 1, %s3211_s23   ;;  %s3215_s20 = sld [smem:[#allocation17_spill]] }
 0xb29   : > { %p29_p10 = scmp.ge.s32.totalorder %s32_s26, 4   ;;  %s3216_s23 = sld [smem:[#allocation22_spill]] }
 0xb2a   : > { %s3217_s24 = sld [smem:[#allocation18_spill]]  ;;  %s3219_s21 = smov %s2684_s22 }
 0xb2b   : > { %s3218_s25 = sld [smem:[#allocation20_spill]]  ;;  %31 = sbr.rel (!%p29_p10) target bundleno = 11 (0xb), region = 141 }
 0xb2e   : > { %s3220_s22 = smov %s3215_s20 }
 0xb30   :  { %2010 = vsyncpa [#allocation3], 1 }
 0xb31   :  { %2012 = vsyncpa [#allocation3 + $0x1], 1 }
 0xb32   :  { %2013 = vsyncpa [#allocation6], 1 }
 0xb33   :  { %2014 = vsyncpa [#allocation9], 1 }
 0xb34   :  { %2015 = vsyncpa [#allocation4], 1 }
 0xb35   :  { %2017 = vsyncpa [#allocation4 + $0x1], 1 }

</bundles_post_ra>
